<compile_context>
chip_gen: v7x
topology: tpu7x:2x2x1
jax: 0.10.0
libtpu: 0.0.40
codegen_flags: <defaults>
</compile_context>

<pallas_src>
import functools

import jax
import jax.numpy as jnp
from jax.experimental import pallas as pl
from jax.experimental.pallas import tpu as pltpu


# MXU operand dtype (cast at the pallas_call boundary). Accumulation + epilogue are f32.
MATMUL_DTYPE = jnp.bfloat16


# ----------------------------------------------------------------------------- kernel
def _make_fused_kernel(B, N, H, T_e, T_d):
    """Fused encoder A3TGCN + decoder A3TGCN + Linear + ReLU (single invocation)."""

    def branch(a, x, w_zh, b_zh, lzw, lzb, lhw, lhb, pw, T):
        # x  : (B*T*N, F), rows ordered (b, t, n)      a : (N, N) normalized adjacency
        # pw : (B*T*N, 1) f32, attention prob per row (softmax(attention)[t])
        # GCNConv_z / GCNConv_h with fused z|h weights:  C = A_hat @ (X @ [Wz|Wh]) + [bz|bh]
        y = jnp.dot(x, w_zh, preferred_element_type=jnp.float32)        # (B*T*N, 2H)
        y = y.astype(a.dtype)
        c = jnp.concatenate(
            [jnp.dot(a, y[i * N:(i + 1) * N, :],
                     preferred_element_type=jnp.float32)                # per-(b,t) block
             for i in range(B * T)], axis=0) + b_zh                     # (B*T*N, 2H)
        cz = c[:, :H].astype(lzw.dtype)
        ch = c[:, H:].astype(lhw.dtype)
        # GRU cell with H == 0 (A3TGCN passes H=None for every period):
        #   H_out = (1 - sigmoid(linear_z(C_z))) * tanh(linear_h(C_h))
        z = jax.nn.sigmoid(jnp.dot(cz, lzw, preferred_element_type=jnp.float32) + lzb)
        ht = jnp.tanh(jnp.dot(ch, lhw, preferred_element_type=jnp.float32) + lhb)
        h = (1.0 - z) * ht * pw                                         # (B*T*N, H) f32
        # attention-weighted sum over the T periods  ->  rows ordered (b, n)
        return jnp.concatenate(
            [sum(h[(b * T + t) * N:(b * T + t + 1) * N, :] for t in range(T))
             for b in range(B)], axis=0)                                # (B*N, H)

    def kernel(xe_ref, xd_ref, a_ref,
               we_ref, be_ref, lzwe_ref, lzbe_ref, lhwe_ref, lhbe_ref, pwe_ref,
               wd_ref, bd_ref, lzwd_ref, lzbd_ref, lhwd_ref, lhbd_ref, pwd_ref,
               wl_ref, bl_ref, out_ref):
        a = a_ref[...]
        h1 = branch(a, xe_ref[...], we_ref[...], be_ref[...], lzwe_ref[...],
                    lzbe_ref[...], lhwe_ref[...], lhbe_ref[...], pwe_ref[...], T_e)
        h2 = branch(a, xd_ref[...], wd_ref[...], bd_ref[...], lzwd_ref[...],
                    lzbd_ref[...], lhwd_ref[...], lhbd_ref[...], pwd_ref[...], T_d)
        wl = wl_ref[...]
        h12 = jnp.concatenate([h1, h2], axis=1).astype(wl.dtype)        # (B*N, 2H)
        yo = jnp.dot(h12, wl, preferred_element_type=jnp.float32) + bl_ref[...]
        out_ref[...] = jnp.maximum(yo, 0.0)                             # (B*N, O)

    return kernel


# ----------------------------------------------------------------------------- glue
def gcn_norm_dense(edge_index, edge_weight, n):
    """Dense D^{-1/2} (A + I) D^{-1/2}, matching PyG gcn_norm(add_self_loops=True)."""
    src, dst = edge_index[0], edge_index[1]
    ew = jnp.ones(src.shape[0], jnp.float32) if edge_weight is None else edge_weight
    a = jnp.zeros((n, n), jnp.float32).at[dst, src].add(ew)
    a = a + jnp.eye(n, dtype=jnp.float32)
    deg = a.sum(axis=1)
    d = jnp.where(deg > 0, jax.lax.rsqrt(deg), 0.0)
    return d[:, None] * a * d[None, :]


def _pack_branch(p, mm_dtype):
    return dict(
        w_zh=jnp.concatenate([p["wz"], p["wh"]], axis=1).astype(mm_dtype),   # (F, 2H)
        b_zh=jnp.concatenate([p["bz"], p["bh"]], axis=1),                    # (1, 2H) f32
        lzw=p["lzw"].astype(mm_dtype), lzb=p["lzb"],
        lhw=p["lhw"].astype(mm_dtype), lhb=p["lhb"],
    )


def _probs_column(attention, B, T, N):
    probs = jax.nn.softmax(attention)                     # (T,) f32
    return jnp.tile(jnp.repeat(probs, N), B)[:, None]     # (B*T*N, 1), row (b,t,n)->p[t]


def a3tgcn_model_forward(params, x_hist, x_forecast, turb_ids, edge_index,
                         edge_weights, *, matmul_dtype=MATMUL_DTYPE):
    # turb_ids / edge_weights are accepted but unused, exactly like the reference forward.
    B, T_e, N, F_e = x_hist.shape
    _, T_d, _, F_d = x_forecast.shape
    H = params["encoder"]["lzw"].shape[0]
    O = params["lin_w1"].shape[1]

    a_hat = gcn_norm_dense(edge_index, None, N).astype(matmul_dtype)    # (N, N), no kron

    # x.permute(0,2,3,1)[..., t] == x[:, t]  ->  fold batch+periods into rows (b, t, n)
    xe = x_hist.reshape(B * T_e * N, F_e).astype(matmul_dtype)
    xd = x_forecast.reshape(B * T_d * N, F_d).astype(matmul_dtype)

    enc = _pack_branch(params["encoder"], matmul_dtype)
    dec = _pack_branch(params["decoder"], matmul_dtype)
    pwe = _probs_column(params["encoder"]["attention"], B, T_e, N)
    pwd = _probs_column(params["decoder"]["attention"], B, T_d, N)
    wlin = jnp.concatenate([params["lin_w1"], params["lin_w2"]],
                           axis=0).astype(matmul_dtype)                 # (2H, O)
    blin = params["lin_b"]                                              # (1, O) f32

    kernel = _make_fused_kernel(B, N, H, T_e, T_d)
    vmem = pl.BlockSpec(memory_space=pltpu.MemorySpace.VMEM)            # whole array, VMEM
    y = pl.pallas_call(
        kernel,
        out_shape=jax.ShapeDtypeStruct((B * N, O), jnp.float32),
        in_specs=[vmem] * 19,
        out_specs=vmem,
    )(xe, xd, a_hat,
      enc["w_zh"], enc["b_zh"], enc["lzw"], enc["lzb"], enc["lhw"], enc["lhb"], pwe,
      dec["w_zh"], dec["b_zh"], dec["lzw"], dec["lzb"], dec["lhw"], dec["lhb"], pwd,
      wlin, blin)

    return jnp.transpose(y.reshape(B, N, O), (0, 2, 1))                 # (B, output_size, N)


# ----------------------------------------------------------------------------- params
def init_params(key, node_features, forecast_size, hidden, periods, output_size):
    keys = jax.random.split(key, 8)

    def w(k, shape, scale=0.1):
        return (scale * jax.random.normal(k, shape)).astype(jnp.float32)

    def cell(kk, in_ch):
        k = jax.random.split(kk, 8)
        return dict(
            wz=w(k[0], (in_ch, hidden)),    # conv_z.lin.weight^T
            bz=w(k[1], (1, hidden)),        # conv_z.bias
            wh=w(k[2], (in_ch, hidden)),    # conv_h.lin.weight^T
            bh=w(k[3], (1, hidden)),        # conv_h.bias
            lzw=w(k[4], (hidden, hidden)),  # linear_z.weight[:, :hidden]^T
            lzb=w(k[5], (1, hidden)),
            lhw=w(k[6], (hidden, hidden)),  # linear_h.weight[:, :hidden]^T
            lhb=w(k[7], (1, hidden)),
        )

    enc = cell(keys[0], node_features)
    enc["attention"] = w(keys[2], (periods,))
    dec = cell(keys[1], forecast_size)
    dec["attention"] = w(keys[3], (output_size,))
    return dict(
        encoder=enc, decoder=dec,
        lin_w1=w(keys[4], (hidden, output_size)),   # self.linear.weight[:, :hidden]^T
        lin_w2=w(keys[5], (hidden, output_size)),   # self.linear.weight[:, hidden:]^T
        lin_b=w(keys[6], (1, output_size)),
    )


# ----------------------------------------------------------------------------- pure-JAX reference
def reference_forward(params, x_hist, x_forecast, edge_index):
    mm = functools.partial(jnp.matmul, precision=jax.lax.Precision.HIGHEST)
    B, T, N, M = x_hist.shape
    a_hat = gcn_norm_dense(edge_index, None, N)

    def run(p, x):
        probs = jax.nn.softmax(p["attention"])
        acc = jnp.zeros((B, N, p["wz"].shape[1]), jnp.float32)
        for t in range(x.shape[1]):
            xt = x[:, t]                                        # (B, N, F)
            cz = mm(a_hat, mm(xt, p["wz"])) + p["bz"]
            ch = mm(a_hat, mm(xt, p["wh"])) + p["bh"]
            z = jax.nn.sigmoid(mm(cz, p["lzw"]) + p["lzb"])
            ht = jnp.tanh(mm(ch, p["lhw"]) + p["lhb"])
            acc = acc + probs[t] * (1.0 - z) * ht
        return acc

    h1 = run(params["encoder"], x_hist)
    h2 = run(params["decoder"], x_forecast)
    y = mm(h1, params["lin_w1"]) + mm(h2, params["lin_w2"]) + params["lin_b"]
    return jnp.transpose(jnp.maximum(y, 0.0), (0, 2, 1))


# ----------------------------------------------------------------------------- main
if __name__ == "__main__":
    B, N = 2, 16
    node_features, forecast_size = 4, 2
    hidden, periods, output_size = 32, 8, 4

    key = jax.random.PRNGKey(0)
    kx, kf, kp = jax.random.split(key, 3)
    x_hist = jax.random.normal(kx, (B, periods, N, node_features), jnp.float32)
    x_forecast = jax.random.normal(kf, (B, output_size, N, forecast_size), jnp.float32)
    turb_ids = jnp.arange(N, dtype=jnp.int32)

    # small undirected ring graph on N nodes
    src = jnp.arange(N, dtype=jnp.int32)
    dst = (src + 1) % N
    edge_index = jnp.stack([jnp.concatenate([src, dst]), jnp.concatenate([dst, src])])
    edge_weights = jnp.ones(edge_index.shape[1], jnp.float32)

    params = init_params(kp, node_features, forecast_size, hidden, periods, output_size)

    out = a3tgcn_model_forward(params, x_hist, x_forecast, turb_ids, edge_index, edge_weights)
    out = jax.block_until_ready(out)
    assert out.shape == (B, output_size, N), out.shape

    ref = reference_forward(params, x_hist, x_forecast, edge_index)
    # bf16 matmul operands / f32 accumulation vs. full-f32 reference.
    tol = 2e-2 if MATMUL_DTYPE == jnp.bfloat16 else 5e-3
    assert jnp.allclose(out, ref, rtol=tol, atol=tol), float(jnp.max(jnp.abs(out - ref)))

    print("KERNEL_OK")
</pallas_src>

<mosaic_0001>
module attributes {stable_mosaic.version = 11 : i64} {
  func.func @kernel(%arg0: memref<256x4xbf16, #tpu.memory_space<vmem>>, %arg1: memref<128x2xbf16, #tpu.memory_space<vmem>>, %arg2: memref<16x16xbf16, #tpu.memory_space<vmem>>, %arg3: memref<4x64xbf16, #tpu.memory_space<vmem>>, %arg4: memref<1x64xf32, #tpu.memory_space<vmem>>, %arg5: memref<32x32xbf16, #tpu.memory_space<vmem>>, %arg6: memref<1x32xf32, #tpu.memory_space<vmem>>, %arg7: memref<32x32xbf16, #tpu.memory_space<vmem>>, %arg8: memref<1x32xf32, #tpu.memory_space<vmem>>, %arg9: memref<256x1xf32, #tpu.memory_space<vmem>>, %arg10: memref<2x64xbf16, #tpu.memory_space<vmem>>, %arg11: memref<1x64xf32, #tpu.memory_space<vmem>>, %arg12: memref<32x32xbf16, #tpu.memory_space<vmem>>, %arg13: memref<1x32xf32, #tpu.memory_space<vmem>>, %arg14: memref<32x32xbf16, #tpu.memory_space<vmem>>, %arg15: memref<1x32xf32, #tpu.memory_space<vmem>>, %arg16: memref<128x1xf32, #tpu.memory_space<vmem>>, %arg17: memref<64x4xbf16, #tpu.memory_space<vmem>>, %arg18: memref<1x4xf32, #tpu.memory_space<vmem>>, %arg19: memref<32x4xf32, #tpu.memory_space<vmem>>) attributes {dimension_semantics = [], scalar_prefetch = 0 : i64, scratch_operands = 0 : i64, tpu.core_type = #tpu.core_type<tc>} {
    %c0 = arith.constant 0 : index
    %c0_0 = arith.constant 0 : index
    %0 = vector.load %arg2[%c0, %c0_0] : memref<16x16xbf16, #tpu.memory_space<vmem>>, vector<16x16xbf16>
    %c0_1 = arith.constant 0 : index
    %c0_2 = arith.constant 0 : index
    %1 = vector.load %arg0[%c0_1, %c0_2] : memref<256x4xbf16, #tpu.memory_space<vmem>>, vector<256x4xbf16>
    %c0_3 = arith.constant 0 : index
    %c0_4 = arith.constant 0 : index
    %2 = vector.load %arg3[%c0_3, %c0_4] : memref<4x64xbf16, #tpu.memory_space<vmem>>, vector<4x64xbf16>
    %c0_5 = arith.constant 0 : index
    %c0_6 = arith.constant 0 : index
    %3 = vector.load %arg4[%c0_5, %c0_6] : memref<1x64xf32, #tpu.memory_space<vmem>>, vector<1x64xf32>
    %c0_7 = arith.constant 0 : index
    %c0_8 = arith.constant 0 : index
    %4 = vector.load %arg5[%c0_7, %c0_8] : memref<32x32xbf16, #tpu.memory_space<vmem>>, vector<32x32xbf16>
    %c0_9 = arith.constant 0 : index
    %c0_10 = arith.constant 0 : index
    %5 = vector.load %arg6[%c0_9, %c0_10] : memref<1x32xf32, #tpu.memory_space<vmem>>, vector<1x32xf32>
    %c0_11 = arith.constant 0 : index
    %c0_12 = arith.constant 0 : index
    %6 = vector.load %arg7[%c0_11, %c0_12] : memref<32x32xbf16, #tpu.memory_space<vmem>>, vector<32x32xbf16>
    %c0_13 = arith.constant 0 : index
    %c0_14 = arith.constant 0 : index
    %7 = vector.load %arg8[%c0_13, %c0_14] : memref<1x32xf32, #tpu.memory_space<vmem>>, vector<1x32xf32>
    %c0_15 = arith.constant 0 : index
    %c0_16 = arith.constant 0 : index
    %8 = vector.load %arg9[%c0_15, %c0_16] : memref<256x1xf32, #tpu.memory_space<vmem>>, vector<256x1xf32>
    %cst = arith.constant dense<0.000000e+00> : vector<256x64xf32>
    %9 = tpu.matmul %1, %2, %cst {dimension_numbers = #tpu.dot_dimension_numbers<[1], [0], [0], [1], [0, 0, 1, 1], [], []>} : vector<256x4xbf16>, vector<4x64xbf16>, vector<256x64xf32> -> vector<256x64xf32>
    %10 = arith.truncf %9 : vector<256x64xf32> to vector<256x64xbf16>
    %11 = vector.extract_strided_slice %10 {offsets = [0, 0], sizes = [16, 64], strides = [1, 1]} : vector<256x64xbf16> to vector<16x64xbf16>
    %cst_17 = arith.constant dense<0.000000e+00> : vector<16x64xf32>
    %12 = tpu.matmul %0, %11, %cst_17 {dimension_numbers = #tpu.dot_dimension_numbers<[1], [0], [0], [1], [0, 0, 1, 1], [], []>} : vector<16x16xbf16>, vector<16x64xbf16>, vector<16x64xf32> -> vector<16x64xf32>
    %13 = vector.extract_strided_slice %10 {offsets = [16, 0], sizes = [16, 64], strides = [1, 1]} : vector<256x64xbf16> to vector<16x64xbf16>
    %cst_18 = arith.constant dense<0.000000e+00> : vector<16x64xf32>
    %14 = tpu.matmul %0, %13, %cst_18 {dimension_numbers = #tpu.dot_dimension_numbers<[1], [0], [0], [1], [0, 0, 1, 1], [], []>} : vector<16x16xbf16>, vector<16x64xbf16>, vector<16x64xf32> -> vector<16x64xf32>
    %15 = vector.extract_strided_slice %10 {offsets = [32, 0], sizes = [16, 64], strides = [1, 1]} : vector<256x64xbf16> to vector<16x64xbf16>
    %cst_19 = arith.constant dense<0.000000e+00> : vector<16x64xf32>
    %16 = tpu.matmul %0, %15, %cst_19 {dimension_numbers = #tpu.dot_dimension_numbers<[1], [0], [0], [1], [0, 0, 1, 1], [], []>} : vector<16x16xbf16>, vector<16x64xbf16>, vector<16x64xf32> -> vector<16x64xf32>
    %17 = vector.extract_strided_slice %10 {offsets = [48, 0], sizes = [16, 64], strides = [1, 1]} : vector<256x64xbf16> to vector<16x64xbf16>
    %cst_20 = arith.constant dense<0.000000e+00> : vector<16x64xf32>
    %18 = tpu.matmul %0, %17, %cst_20 {dimension_numbers = #tpu.dot_dimension_numbers<[1], [0], [0], [1], [0, 0, 1, 1], [], []>} : vector<16x16xbf16>, vector<16x64xbf16>, vector<16x64xf32> -> vector<16x64xf32>
    %19 = vector.extract_strided_slice %10 {offsets = [64, 0], sizes = [16, 64], strides = [1, 1]} : vector<256x64xbf16> to vector<16x64xbf16>
    %cst_21 = arith.constant dense<0.000000e+00> : vector<16x64xf32>
    %20 = tpu.matmul %0, %19, %cst_21 {dimension_numbers = #tpu.dot_dimension_numbers<[1], [0], [0], [1], [0, 0, 1, 1], [], []>} : vector<16x16xbf16>, vector<16x64xbf16>, vector<16x64xf32> -> vector<16x64xf32>
    %21 = vector.extract_strided_slice %10 {offsets = [80, 0], sizes = [16, 64], strides = [1, 1]} : vector<256x64xbf16> to vector<16x64xbf16>
    %cst_22 = arith.constant dense<0.000000e+00> : vector<16x64xf32>
    %22 = tpu.matmul %0, %21, %cst_22 {dimension_numbers = #tpu.dot_dimension_numbers<[1], [0], [0], [1], [0, 0, 1, 1], [], []>} : vector<16x16xbf16>, vector<16x64xbf16>, vector<16x64xf32> -> vector<16x64xf32>
    %23 = vector.extract_strided_slice %10 {offsets = [96, 0], sizes = [16, 64], strides = [1, 1]} : vector<256x64xbf16> to vector<16x64xbf16>
    %cst_23 = arith.constant dense<0.000000e+00> : vector<16x64xf32>
    %24 = tpu.matmul %0, %23, %cst_23 {dimension_numbers = #tpu.dot_dimension_numbers<[1], [0], [0], [1], [0, 0, 1, 1], [], []>} : vector<16x16xbf16>, vector<16x64xbf16>, vector<16x64xf32> -> vector<16x64xf32>
    %25 = vector.extract_strided_slice %10 {offsets = [112, 0], sizes = [16, 64], strides = [1, 1]} : vector<256x64xbf16> to vector<16x64xbf16>
    %cst_24 = arith.constant dense<0.000000e+00> : vector<16x64xf32>
    %26 = tpu.matmul %0, %25, %cst_24 {dimension_numbers = #tpu.dot_dimension_numbers<[1], [0], [0], [1], [0, 0, 1, 1], [], []>} : vector<16x16xbf16>, vector<16x64xbf16>, vector<16x64xf32> -> vector<16x64xf32>
    %27 = vector.extract_strided_slice %10 {offsets = [128, 0], sizes = [16, 64], strides = [1, 1]} : vector<256x64xbf16> to vector<16x64xbf16>
    %cst_25 = arith.constant dense<0.000000e+00> : vector<16x64xf32>
    %28 = tpu.matmul %0, %27, %cst_25 {dimension_numbers = #tpu.dot_dimension_numbers<[1], [0], [0], [1], [0, 0, 1, 1], [], []>} : vector<16x16xbf16>, vector<16x64xbf16>, vector<16x64xf32> -> vector<16x64xf32>
    %29 = vector.extract_strided_slice %10 {offsets = [144, 0], sizes = [16, 64], strides = [1, 1]} : vector<256x64xbf16> to vector<16x64xbf16>
    %cst_26 = arith.constant dense<0.000000e+00> : vector<16x64xf32>
    %30 = tpu.matmul %0, %29, %cst_26 {dimension_numbers = #tpu.dot_dimension_numbers<[1], [0], [0], [1], [0, 0, 1, 1], [], []>} : vector<16x16xbf16>, vector<16x64xbf16>, vector<16x64xf32> -> vector<16x64xf32>
    %31 = vector.extract_strided_slice %10 {offsets = [160, 0], sizes = [16, 64], strides = [1, 1]} : vector<256x64xbf16> to vector<16x64xbf16>
    %cst_27 = arith.constant dense<0.000000e+00> : vector<16x64xf32>
    %32 = tpu.matmul %0, %31, %cst_27 {dimension_numbers = #tpu.dot_dimension_numbers<[1], [0], [0], [1], [0, 0, 1, 1], [], []>} : vector<16x16xbf16>, vector<16x64xbf16>, vector<16x64xf32> -> vector<16x64xf32>
    %33 = vector.extract_strided_slice %10 {offsets = [176, 0], sizes = [16, 64], strides = [1, 1]} : vector<256x64xbf16> to vector<16x64xbf16>
    %cst_28 = arith.constant dense<0.000000e+00> : vector<16x64xf32>
    %34 = tpu.matmul %0, %33, %cst_28 {dimension_numbers = #tpu.dot_dimension_numbers<[1], [0], [0], [1], [0, 0, 1, 1], [], []>} : vector<16x16xbf16>, vector<16x64xbf16>, vector<16x64xf32> -> vector<16x64xf32>
    %35 = vector.extract_strided_slice %10 {offsets = [192, 0], sizes = [16, 64], strides = [1, 1]} : vector<256x64xbf16> to vector<16x64xbf16>
    %cst_29 = arith.constant dense<0.000000e+00> : vector<16x64xf32>
    %36 = tpu.matmul %0, %35, %cst_29 {dimension_numbers = #tpu.dot_dimension_numbers<[1], [0], [0], [1], [0, 0, 1, 1], [], []>} : vector<16x16xbf16>, vector<16x64xbf16>, vector<16x64xf32> -> vector<16x64xf32>
    %37 = vector.extract_strided_slice %10 {offsets = [208, 0], sizes = [16, 64], strides = [1, 1]} : vector<256x64xbf16> to vector<16x64xbf16>
    %cst_30 = arith.constant dense<0.000000e+00> : vector<16x64xf32>
    %38 = tpu.matmul %0, %37, %cst_30 {dimension_numbers = #tpu.dot_dimension_numbers<[1], [0], [0], [1], [0, 0, 1, 1], [], []>} : vector<16x16xbf16>, vector<16x64xbf16>, vector<16x64xf32> -> vector<16x64xf32>
    %39 = vector.extract_strided_slice %10 {offsets = [224, 0], sizes = [16, 64], strides = [1, 1]} : vector<256x64xbf16> to vector<16x64xbf16>
    %cst_31 = arith.constant dense<0.000000e+00> : vector<16x64xf32>
    %40 = tpu.matmul %0, %39, %cst_31 {dimension_numbers = #tpu.dot_dimension_numbers<[1], [0], [0], [1], [0, 0, 1, 1], [], []>} : vector<16x16xbf16>, vector<16x64xbf16>, vector<16x64xf32> -> vector<16x64xf32>
    %41 = vector.extract_strided_slice %10 {offsets = [240, 0], sizes = [16, 64], strides = [1, 1]} : vector<256x64xbf16> to vector<16x64xbf16>
    %cst_32 = arith.constant dense<0.000000e+00> : vector<16x64xf32>
    %42 = tpu.matmul %0, %41, %cst_32 {dimension_numbers = #tpu.dot_dimension_numbers<[1], [0], [0], [1], [0, 0, 1, 1], [], []>} : vector<16x16xbf16>, vector<16x64xbf16>, vector<16x64xf32> -> vector<16x64xf32>
    %43 = tpu.concatenate %12, %14, %16, %18, %20, %22, %24, %26, %28, %30, %32, %34, %36, %38, %40, %42 in 0 : vector<16x64xf32>, vector<16x64xf32>, vector<16x64xf32>, vector<16x64xf32>, vector<16x64xf32>, vector<16x64xf32>, vector<16x64xf32>, vector<16x64xf32>, vector<16x64xf32>, vector<16x64xf32>, vector<16x64xf32>, vector<16x64xf32>, vector<16x64xf32>, vector<16x64xf32>, vector<16x64xf32>, vector<16x64xf32> -> vector<256x64xf32>
    %44 = vector.broadcast %3 : vector<1x64xf32> to vector<256x64xf32>
    %45 = arith.addf %43, %44 : vector<256x64xf32>
    %46 = vector.extract_strided_slice %45 {offsets = [0, 0], sizes = [256, 32], strides = [1, 1]} : vector<256x64xf32> to vector<256x32xf32>
    %47 = arith.truncf %46 : vector<256x32xf32> to vector<256x32xbf16>
    %48 = vector.extract_strided_slice %45 {offsets = [0, 32], sizes = [256, 32], strides = [1, 1]} : vector<256x64xf32> to vector<256x32xf32>
    %49 = arith.truncf %48 : vector<256x32xf32> to vector<256x32xbf16>
    %cst_33 = arith.constant dense<0.000000e+00> : vector<256x32xf32>
    %50 = tpu.matmul %47, %4, %cst_33 {dimension_numbers = #tpu.dot_dimension_numbers<[1], [0], [0], [1], [0, 0, 1, 1], [], []>} : vector<256x32xbf16>, vector<32x32xbf16>, vector<256x32xf32> -> vector<256x32xf32>
    %51 = vector.broadcast %5 : vector<1x32xf32> to vector<256x32xf32>
    %52 = arith.addf %50, %51 : vector<256x32xf32>
    %53 = arith.negf %52 : vector<256x32xf32>
    %54 = math.exp %53 : vector<256x32xf32>
    %cst_34 = arith.constant 1.000000e+00 : f32
    %55 = vector.broadcast %cst_34 : f32 to vector<256x32xf32>
    %56 = arith.addf %55, %54 : vector<256x32xf32>
    %57 = arith.divf %55, %56 : vector<256x32xf32>
    %cst_35 = arith.constant dense<0.000000e+00> : vector<256x32xf32>
    %58 = tpu.matmul %49, %6, %cst_35 {dimension_numbers = #tpu.dot_dimension_numbers<[1], [0], [0], [1], [0, 0, 1, 1], [], []>} : vector<256x32xbf16>, vector<32x32xbf16>, vector<256x32xf32> -> vector<256x32xf32>
    %59 = vector.broadcast %7 : vector<1x32xf32> to vector<256x32xf32>
    %60 = arith.addf %58, %59 : vector<256x32xf32>
    %61 = math.tanh %60 : vector<256x32xf32>
    %cst_36 = arith.constant 1.000000e+00 : f32
    %62 = vector.broadcast %cst_36 : f32 to vector<256x32xf32>
    %63 = arith.subf %62, %57 : vector<256x32xf32>
    %64 = arith.mulf %63, %61 : vector<256x32xf32>
    %65 = vector.broadcast %8 : vector<256x1xf32> to vector<256x32xf32>
    %66 = arith.mulf %64, %65 : vector<256x32xf32>
    %67 = vector.extract_strided_slice %66 {offsets = [0, 0], sizes = [16, 32], strides = [1, 1]} : vector<256x32xf32> to vector<16x32xf32>
    %cst_37 = arith.constant 0.000000e+00 : f32
    %68 = vector.broadcast %cst_37 : f32 to vector<16x32xf32>
    %69 = arith.addf %68, %67 : vector<16x32xf32>
    %70 = vector.extract_strided_slice %66 {offsets = [16, 0], sizes = [16, 32], strides = [1, 1]} : vector<256x32xf32> to vector<16x32xf32>
    %71 = arith.addf %69, %70 : vector<16x32xf32>
    %72 = vector.extract_strided_slice %66 {offsets = [32, 0], sizes = [16, 32], strides = [1, 1]} : vector<256x32xf32> to vector<16x32xf32>
    %73 = arith.addf %71, %72 : vector<16x32xf32>
    %74 = vector.extract_strided_slice %66 {offsets = [48, 0], sizes = [16, 32], strides = [1, 1]} : vector<256x32xf32> to vector<16x32xf32>
    %75 = arith.addf %73, %74 : vector<16x32xf32>
    %76 = vector.extract_strided_slice %66 {offsets = [64, 0], sizes = [16, 32], strides = [1, 1]} : vector<256x32xf32> to vector<16x32xf32>
    %77 = arith.addf %75, %76 : vector<16x32xf32>
    %78 = vector.extract_strided_slice %66 {offsets = [80, 0], sizes = [16, 32], strides = [1, 1]} : vector<256x32xf32> to vector<16x32xf32>
    %79 = arith.addf %77, %78 : vector<16x32xf32>
    %80 = vector.extract_strided_slice %66 {offsets = [96, 0], sizes = [16, 32], strides = [1, 1]} : vector<256x32xf32> to vector<16x32xf32>
    %81 = arith.addf %79, %80 : vector<16x32xf32>
    %82 = vector.extract_strided_slice %66 {offsets = [112, 0], sizes = [16, 32], strides = [1, 1]} : vector<256x32xf32> to vector<16x32xf32>
    %83 = arith.addf %81, %82 : vector<16x32xf32>
    %84 = vector.extract_strided_slice %66 {offsets = [128, 0], sizes = [16, 32], strides = [1, 1]} : vector<256x32xf32> to vector<16x32xf32>
    %cst_38 = arith.constant 0.000000e+00 : f32
    %85 = vector.broadcast %cst_38 : f32 to vector<16x32xf32>
    %86 = arith.addf %85, %84 : vector<16x32xf32>
    %87 = vector.extract_strided_slice %66 {offsets = [144, 0], sizes = [16, 32], strides = [1, 1]} : vector<256x32xf32> to vector<16x32xf32>
    %88 = arith.addf %86, %87 : vector<16x32xf32>
    %89 = vector.extract_strided_slice %66 {offsets = [160, 0], sizes = [16, 32], strides = [1, 1]} : vector<256x32xf32> to vector<16x32xf32>
    %90 = arith.addf %88, %89 : vector<16x32xf32>
    %91 = vector.extract_strided_slice %66 {offsets = [176, 0], sizes = [16, 32], strides = [1, 1]} : vector<256x32xf32> to vector<16x32xf32>
    %92 = arith.addf %90, %91 : vector<16x32xf32>
    %93 = vector.extract_strided_slice %66 {offsets = [192, 0], sizes = [16, 32], strides = [1, 1]} : vector<256x32xf32> to vector<16x32xf32>
    %94 = arith.addf %92, %93 : vector<16x32xf32>
    %95 = vector.extract_strided_slice %66 {offsets = [208, 0], sizes = [16, 32], strides = [1, 1]} : vector<256x32xf32> to vector<16x32xf32>
    %96 = arith.addf %94, %95 : vector<16x32xf32>
    %97 = vector.extract_strided_slice %66 {offsets = [224, 0], sizes = [16, 32], strides = [1, 1]} : vector<256x32xf32> to vector<16x32xf32>
    %98 = arith.addf %96, %97 : vector<16x32xf32>
    %99 = vector.extract_strided_slice %66 {offsets = [240, 0], sizes = [16, 32], strides = [1, 1]} : vector<256x32xf32> to vector<16x32xf32>
    %100 = arith.addf %98, %99 : vector<16x32xf32>
    %101 = tpu.concatenate %83, %100 in 0 : vector<16x32xf32>, vector<16x32xf32> -> vector<32x32xf32>
    %c0_39 = arith.constant 0 : index
    %c0_40 = arith.constant 0 : index
    %102 = vector.load %arg1[%c0_39, %c0_40] : memref<128x2xbf16, #tpu.memory_space<vmem>>, vector<128x2xbf16>
    %c0_41 = arith.constant 0 : index
    %c0_42 = arith.constant 0 : index
    %103 = vector.load %arg10[%c0_41, %c0_42] : memref<2x64xbf16, #tpu.memory_space<vmem>>, vector<2x64xbf16>
    %c0_43 = arith.constant 0 : index
    %c0_44 = arith.constant 0 : index
    %104 = vector.load %arg11[%c0_43, %c0_44] : memref<1x64xf32, #tpu.memory_space<vmem>>, vector<1x64xf32>
    %c0_45 = arith.constant 0 : index
    %c0_46 = arith.constant 0 : index
    %105 = vector.load %arg12[%c0_45, %c0_46] : memref<32x32xbf16, #tpu.memory_space<vmem>>, vector<32x32xbf16>
    %c0_47 = arith.constant 0 : index
    %c0_48 = arith.constant 0 : index
    %106 = vector.load %arg13[%c0_47, %c0_48] : memref<1x32xf32, #tpu.memory_space<vmem>>, vector<1x32xf32>
    %c0_49 = arith.constant 0 : index
    %c0_50 = arith.constant 0 : index
    %107 = vector.load %arg14[%c0_49, %c0_50] : memref<32x32xbf16, #tpu.memory_space<vmem>>, vector<32x32xbf16>
    %c0_51 = arith.constant 0 : index
    %c0_52 = arith.constant 0 : index
    %108 = vector.load %arg15[%c0_51, %c0_52] : memref<1x32xf32, #tpu.memory_space<vmem>>, vector<1x32xf32>
    %c0_53 = arith.constant 0 : index
    %c0_54 = arith.constant 0 : index
    %109 = vector.load %arg16[%c0_53, %c0_54] : memref<128x1xf32, #tpu.memory_space<vmem>>, vector<128x1xf32>
    %cst_55 = arith.constant dense<0.000000e+00> : vector<128x64xf32>
    %110 = tpu.matmul %102, %103, %cst_55 {dimension_numbers = #tpu.dot_dimension_numbers<[1], [0], [0], [1], [0, 0, 1, 1], [], []>} : vector<128x2xbf16>, vector<2x64xbf16>, vector<128x64xf32> -> vector<128x64xf32>
    %111 = arith.truncf %110 : vector<128x64xf32> to vector<128x64xbf16>
    %112 = vector.extract_strided_slice %111 {offsets = [0, 0], sizes = [16, 64], strides = [1, 1]} : vector<128x64xbf16> to vector<16x64xbf16>
    %cst_56 = arith.constant dense<0.000000e+00> : vector<16x64xf32>
    %113 = tpu.matmul %0, %112, %cst_56 {dimension_numbers = #tpu.dot_dimension_numbers<[1], [0], [0], [1], [0, 0, 1, 1], [], []>} : vector<16x16xbf16>, vector<16x64xbf16>, vector<16x64xf32> -> vector<16x64xf32>
    %114 = vector.extract_strided_slice %111 {offsets = [16, 0], sizes = [16, 64], strides = [1, 1]} : vector<128x64xbf16> to vector<16x64xbf16>
    %cst_57 = arith.constant dense<0.000000e+00> : vector<16x64xf32>
    %115 = tpu.matmul %0, %114, %cst_57 {dimension_numbers = #tpu.dot_dimension_numbers<[1], [0], [0], [1], [0, 0, 1, 1], [], []>} : vector<16x16xbf16>, vector<16x64xbf16>, vector<16x64xf32> -> vector<16x64xf32>
    %116 = vector.extract_strided_slice %111 {offsets = [32, 0], sizes = [16, 64], strides = [1, 1]} : vector<128x64xbf16> to vector<16x64xbf16>
    %cst_58 = arith.constant dense<0.000000e+00> : vector<16x64xf32>
    %117 = tpu.matmul %0, %116, %cst_58 {dimension_numbers = #tpu.dot_dimension_numbers<[1], [0], [0], [1], [0, 0, 1, 1], [], []>} : vector<16x16xbf16>, vector<16x64xbf16>, vector<16x64xf32> -> vector<16x64xf32>
    %118 = vector.extract_strided_slice %111 {offsets = [48, 0], sizes = [16, 64], strides = [1, 1]} : vector<128x64xbf16> to vector<16x64xbf16>
    %cst_59 = arith.constant dense<0.000000e+00> : vector<16x64xf32>
    %119 = tpu.matmul %0, %118, %cst_59 {dimension_numbers = #tpu.dot_dimension_numbers<[1], [0], [0], [1], [0, 0, 1, 1], [], []>} : vector<16x16xbf16>, vector<16x64xbf16>, vector<16x64xf32> -> vector<16x64xf32>
    %120 = vector.extract_strided_slice %111 {offsets = [64, 0], sizes = [16, 64], strides = [1, 1]} : vector<128x64xbf16> to vector<16x64xbf16>
    %cst_60 = arith.constant dense<0.000000e+00> : vector<16x64xf32>
    %121 = tpu.matmul %0, %120, %cst_60 {dimension_numbers = #tpu.dot_dimension_numbers<[1], [0], [0], [1], [0, 0, 1, 1], [], []>} : vector<16x16xbf16>, vector<16x64xbf16>, vector<16x64xf32> -> vector<16x64xf32>
    %122 = vector.extract_strided_slice %111 {offsets = [80, 0], sizes = [16, 64], strides = [1, 1]} : vector<128x64xbf16> to vector<16x64xbf16>
    %cst_61 = arith.constant dense<0.000000e+00> : vector<16x64xf32>
    %123 = tpu.matmul %0, %122, %cst_61 {dimension_numbers = #tpu.dot_dimension_numbers<[1], [0], [0], [1], [0, 0, 1, 1], [], []>} : vector<16x16xbf16>, vector<16x64xbf16>, vector<16x64xf32> -> vector<16x64xf32>
    %124 = vector.extract_strided_slice %111 {offsets = [96, 0], sizes = [16, 64], strides = [1, 1]} : vector<128x64xbf16> to vector<16x64xbf16>
    %cst_62 = arith.constant dense<0.000000e+00> : vector<16x64xf32>
    %125 = tpu.matmul %0, %124, %cst_62 {dimension_numbers = #tpu.dot_dimension_numbers<[1], [0], [0], [1], [0, 0, 1, 1], [], []>} : vector<16x16xbf16>, vector<16x64xbf16>, vector<16x64xf32> -> vector<16x64xf32>
    %126 = vector.extract_strided_slice %111 {offsets = [112, 0], sizes = [16, 64], strides = [1, 1]} : vector<128x64xbf16> to vector<16x64xbf16>
    %cst_63 = arith.constant dense<0.000000e+00> : vector<16x64xf32>
    %127 = tpu.matmul %0, %126, %cst_63 {dimension_numbers = #tpu.dot_dimension_numbers<[1], [0], [0], [1], [0, 0, 1, 1], [], []>} : vector<16x16xbf16>, vector<16x64xbf16>, vector<16x64xf32> -> vector<16x64xf32>
    %128 = tpu.concatenate %113, %115, %117, %119, %121, %123, %125, %127 in 0 : vector<16x64xf32>, vector<16x64xf32>, vector<16x64xf32>, vector<16x64xf32>, vector<16x64xf32>, vector<16x64xf32>, vector<16x64xf32>, vector<16x64xf32> -> vector<128x64xf32>
    %129 = vector.broadcast %104 : vector<1x64xf32> to vector<128x64xf32>
    %130 = arith.addf %128, %129 : vector<128x64xf32>
    %131 = vector.extract_strided_slice %130 {offsets = [0, 0], sizes = [128, 32], strides = [1, 1]} : vector<128x64xf32> to vector<128x32xf32>
    %132 = arith.truncf %131 : vector<128x32xf32> to vector<128x32xbf16>
    %133 = vector.extract_strided_slice %130 {offsets = [0, 32], sizes = [128, 32], strides = [1, 1]} : vector<128x64xf32> to vector<128x32xf32>
    %134 = arith.truncf %133 : vector<128x32xf32> to vector<128x32xbf16>
    %cst_64 = arith.constant dense<0.000000e+00> : vector<128x32xf32>
    %135 = tpu.matmul %132, %105, %cst_64 {dimension_numbers = #tpu.dot_dimension_numbers<[1], [0], [0], [1], [0, 0, 1, 1], [], []>} : vector<128x32xbf16>, vector<32x32xbf16>, vector<128x32xf32> -> vector<128x32xf32>
    %136 = vector.broadcast %106 : vector<1x32xf32> to vector<128x32xf32>
    %137 = arith.addf %135, %136 : vector<128x32xf32>
    %138 = arith.negf %137 : vector<128x32xf32>
    %139 = math.exp %138 : vector<128x32xf32>
    %cst_65 = arith.constant 1.000000e+00 : f32
    %140 = vector.broadcast %cst_65 : f32 to vector<128x32xf32>
    %141 = arith.addf %140, %139 : vector<128x32xf32>
    %142 = arith.divf %140, %141 : vector<128x32xf32>
    %cst_66 = arith.constant dense<0.000000e+00> : vector<128x32xf32>
    %143 = tpu.matmul %134, %107, %cst_66 {dimension_numbers = #tpu.dot_dimension_numbers<[1], [0], [0], [1], [0, 0, 1, 1], [], []>} : vector<128x32xbf16>, vector<32x32xbf16>, vector<128x32xf32> -> vector<128x32xf32>
    %144 = vector.broadcast %108 : vector<1x32xf32> to vector<128x32xf32>
    %145 = arith.addf %143, %144 : vector<128x32xf32>
    %146 = math.tanh %145 : vector<128x32xf32>
    %cst_67 = arith.constant 1.000000e+00 : f32
    %147 = vector.broadcast %cst_67 : f32 to vector<128x32xf32>
    %148 = arith.subf %147, %142 : vector<128x32xf32>
    %149 = arith.mulf %148, %146 : vector<128x32xf32>
    %150 = vector.broadcast %109 : vector<128x1xf32> to vector<128x32xf32>
    %151 = arith.mulf %149, %150 : vector<128x32xf32>
    %152 = vector.extract_strided_slice %151 {offsets = [0, 0], sizes = [16, 32], strides = [1, 1]} : vector<128x32xf32> to vector<16x32xf32>
    %cst_68 = arith.constant 0.000000e+00 : f32
    %153 = vector.broadcast %cst_68 : f32 to vector<16x32xf32>
    %154 = arith.addf %153, %152 : vector<16x32xf32>
    %155 = vector.extract_strided_slice %151 {offsets = [16, 0], sizes = [16, 32], strides = [1, 1]} : vector<128x32xf32> to vector<16x32xf32>
    %156 = arith.addf %154, %155 : vector<16x32xf32>
    %157 = vector.extract_strided_slice %151 {offsets = [32, 0], sizes = [16, 32], strides = [1, 1]} : vector<128x32xf32> to vector<16x32xf32>
    %158 = arith.addf %156, %157 : vector<16x32xf32>
    %159 = vector.extract_strided_slice %151 {offsets = [48, 0], sizes = [16, 32], strides = [1, 1]} : vector<128x32xf32> to vector<16x32xf32>
    %160 = arith.addf %158, %159 : vector<16x32xf32>
    %161 = vector.extract_strided_slice %151 {offsets = [64, 0], sizes = [16, 32], strides = [1, 1]} : vector<128x32xf32> to vector<16x32xf32>
    %cst_69 = arith.constant 0.000000e+00 : f32
    %162 = vector.broadcast %cst_69 : f32 to vector<16x32xf32>
    %163 = arith.addf %162, %161 : vector<16x32xf32>
    %164 = vector.extract_strided_slice %151 {offsets = [80, 0], sizes = [16, 32], strides = [1, 1]} : vector<128x32xf32> to vector<16x32xf32>
    %165 = arith.addf %163, %164 : vector<16x32xf32>
    %166 = vector.extract_strided_slice %151 {offsets = [96, 0], sizes = [16, 32], strides = [1, 1]} : vector<128x32xf32> to vector<16x32xf32>
    %167 = arith.addf %165, %166 : vector<16x32xf32>
    %168 = vector.extract_strided_slice %151 {offsets = [112, 0], sizes = [16, 32], strides = [1, 1]} : vector<128x32xf32> to vector<16x32xf32>
    %169 = arith.addf %167, %168 : vector<16x32xf32>
    %170 = tpu.concatenate %160, %169 in 0 : vector<16x32xf32>, vector<16x32xf32> -> vector<32x32xf32>
    %c0_70 = arith.constant 0 : index
    %c0_71 = arith.constant 0 : index
    %171 = vector.load %arg17[%c0_70, %c0_71] : memref<64x4xbf16, #tpu.memory_space<vmem>>, vector<64x4xbf16>
    %172 = tpu.concatenate %101, %170 in 1 : vector<32x32xf32>, vector<32x32xf32> -> vector<32x64xf32>
    %173 = arith.truncf %172 : vector<32x64xf32> to vector<32x64xbf16>
    %cst_72 = arith.constant dense<0.000000e+00> : vector<32x4xf32>
    %174 = tpu.matmul %173, %171, %cst_72 {dimension_numbers = #tpu.dot_dimension_numbers<[1], [0], [0], [1], [0, 0, 1, 1], [], []>} : vector<32x64xbf16>, vector<64x4xbf16>, vector<32x4xf32> -> vector<32x4xf32>
    %c0_73 = arith.constant 0 : index
    %c0_74 = arith.constant 0 : index
    %175 = vector.load %arg18[%c0_73, %c0_74] : memref<1x4xf32, #tpu.memory_space<vmem>>, vector<1x4xf32>
    %176 = vector.broadcast %175 : vector<1x4xf32> to vector<32x4xf32>
    %177 = arith.addf %174, %176 : vector<32x4xf32>
    %cst_75 = arith.constant 0.000000e+00 : f32
    %178 = vector.broadcast %cst_75 : f32 to vector<32x4xf32>
    %179 = arith.maximumf %177, %178 : vector<32x4xf32>
    %c0_76 = arith.constant 0 : index
    %c0_77 = arith.constant 0 : index
    %180 = vector.load %arg19[%c0_76, %c0_77] : memref<32x4xf32, #tpu.memory_space<vmem>>, vector<32x4xf32>
    tpu.vector_store %arg19[%c0_76, %c0_77], %179 {strides = array<i32>} : memref<32x4xf32, #tpu.memory_space<vmem>>, vector<32x4xf32>,
    return
  }
}

</mosaic_0001>

<bundles_post_ra>
// kernel: tpu_custom_call.1
= control target key start
LH: loop header
LB: loop body
LE: loop exit
PB: predicated region body
PF: predicated region fallthrough
CT: control target
= control target key end

     0   :  { %vm270_vm0 = vcmask 1041408   ;;  %vm221_vm1 = vcmask 31744   ;;  %v4439_v18 = vmov 0.0   ;;  %vm4440_vm2 = vmmov 0   ;;  %s5534_s3 = inlined_call_operand.vmem [shape: bf16[4,64], index: 3, kind: input, shape index: {}]   ;;  %s5535_s0 = inlined_call_operand.vmem [shape: bf16[256,4], index: 0, kind: input, shape index: {}]   ;;  %s5536_s2 = inlined_call_operand.vmem [shape: bf16[16,16], index: 2, kind: input, shape index: {}]   ;;  %s5537_s5 = inlined_call_operand.vmem [shape: bf16[32,32], index: 5, kind: input, shape index: {}]   ;;  %s5538_s10 = inlined_call_operand.vmem [shape: bf16[2,64], index: 10, kind: input, shape index: {}]   ;;  %s5539_s1 = inlined_call_operand.vmem [shape: bf16[128,2], index: 1, kind: input, shape index: {}]   ;;  %s5540_s7 = inlined_call_operand.vmem [shape: bf16[32,32], index: 7, kind: input, shape index: {}]   ;;  %s5541_s4 = inlined_call_operand.vmem [shape: f32[1,64], index: 4, kind: input, shape index: {}]   ;;  %s5542_s6 = inlined_call_operand.vmem [shape: f32[1,32], index: 6, kind: input, shape index: {}]   ;;  %s5543_s8 = inlined_call_operand.vmem [shape: f32[1,32], index: 8, kind: input, shape index: {}]   ;;  %s5544_s12 = inlined_call_operand.vmem [shape: bf16[32,32], index: 12, kind: input, shape index: {}]   ;;  %s5545_s14 = inlined_call_operand.vmem [shape: bf16[32,32], index: 14, kind: input, shape index: {}]   ;;  %s5546_s11 = inlined_call_operand.vmem [shape: f32[1,64], index: 11, kind: input, shape index: {}]   ;;  %s5547_s16 = inlined_call_operand.vmem [shape: f32[128,1], index: 16, kind: input, shape index: {}]   ;;  %s5548_s9 = inlined_call_operand.vmem [shape: f32[256,1], index: 9, kind: input, shape index: {}]   ;;  %s5549_s13 = inlined_call_operand.vmem [shape: f32[1,32], index: 13, kind: input, shape index: {}]   ;;  %s5550_s15 = inlined_call_operand.vmem [shape: f32[1,32], index: 15, kind: input, shape index: {}]   ;;  %s5551_s17 = inlined_call_operand.vmem [shape: bf16[64,4], index: 17, kind: input, shape index: {}]   ;;  %s5552_s18 = inlined_call_operand.vmem [shape: f32[1,4], index: 18, kind: input, shape index: {}]   ;;  %s5553_s19 = inlined_call_operand.vmem [shape: f32[32,4], index: 19, kind: output, shape index: {}]  }
   0x1   :  { %5557 = sst [smem:[#allocation2_spill]] %s5534_s3  ;;  %3808 = vmatprep.subr.bf16.mxu1 %v4439_v18  ;;  %3810 = vmatprep.mubr.msk.bf16.mxu1 %vm4440_vm2, %v4439_v18  ;;  %vm456_vm3 = vcmask 130048   ;;  %vm2294_vm4 = vcmask 1040384   ;;  %vm1188_vm5 = vcmask 261120   ;;  %vm2269_vm6 = vcmask 15360  }
   0x2   :  { %5558 = sst [smem:[#allocation3_spill]] %s5535_s0  ;;  %s5561_s20 = sld [smem:[#allocation2_spill]]  ;;  %vm3380_vm7 = vcmask 523264  }
   0x3   :  { %5559 = sst [smem:[#allocation4_spill]] %s5536_s2  ;;  %s5562_s22 = sld [smem:[#allocation3_spill]] }
   0x4   :  { %5560 = sst [smem:[#allocation5_spill]] %s5537_s5  ;;  %s5563_s25 = sld [smem:[#allocation4_spill]] }
   0x5   :  { %s5564_s27 = sld [smem:[#allocation5_spill]]  ;;  %s4443_s2 = smov 32  }
   0x8   :  { %v97_v0 = vld [vmem:[%s5561_s20] sm:$0x3] }
   0x9   :  { %4094 = vmatprep.subr.msk.bf16.mxu0 %vm270_vm0, %v97_v0  ;;  %v272_v1 = vsel %vm270_vm0, %v97_v0, 0  ;;  %v4113_v2 = vld [vmem:[%s5562_s22] sm:$0xff]   ;;  %v4114_v3 = vld [vmem:[%s5562_s22 + $0x8] sm:$0xff]   ;;  %v4115_v4 = vld [vmem:[%s5562_s22 + $0x10] sm:$0xff]  }
   0xa   :  { %3775 = vmatpush3.bf16.msra.mxu0 %v272_v1  ;;  %3776 = vmatprep.mubr.msk.bf16.mxu0 %vm221_vm1, %v4113_v2  ;;  %v4116_v5 = vld [vmem:[%s5562_s22 + $0x18] sm:$0xff]   ;;  %v4117_v6 = vld [vmem:[%s5562_s22 + $0x20] sm:$0xff]   ;;  %v4118_v7 = vld [vmem:[%s5562_s22 + $0x28] sm:$0xff]  }
   0xb   :  { %v4119_v8 = vld [vmem:[%s5562_s22 + $0x30] sm:$0xff]   ;;  %v4120_v9 = vld [vmem:[%s5562_s22 + $0x38] sm:$0xff]   ;;  %v4121_v10 = vld [vmem:[%s5562_s22 + $0x40] sm:$0xff]   ;;  %3856 = vmatprep.subr.bf16.mxu0 %v4439_v18 }
   0xc   :  { %v4122_v11 = vld [vmem:[%s5562_s22 + $0x48] sm:$0xff]   ;;  %v4123_v12 = vld [vmem:[%s5562_s22 + $0x50] sm:$0xff]   ;;  %v4124_v13 = vld [vmem:[%s5562_s22 + $0x58] sm:$0xff]  }
   0xd   :  { %3777 = vmatmul.mubr.msk.bf16.vlgmr.msra.gmra.mrb[0].mxu0 %vm221_vm1, %v4114_v3  ;;  %v4125_v14 = vld [vmem:[%s5562_s22 + $0x60] sm:$0xff]   ;;  %v4126_v15 = vld [vmem:[%s5562_s22 + $0x68] sm:$0xff]   ;;  %v4127_v16 = vld [vmem:[%s5562_s22 + $0x70] sm:$0xff]  }
   0xe   :  { %3780 = vmatprep.mubr.msk.bf16.mxu0 %vm221_vm1, %v4115_v4  ;;  %v4128_v17 = vld [vmem:[%s5562_s22 + $0x78] sm:$0xff]   ;;  %v4620_v25 = vld [vmem:[%s5563_s25] sm:$0xff]  }
   0xf   :  { %v4130_v4 = vld [vmem:[%s5564_s27] sm:$0xff]  }
  0x15   :  { %3781 = vmatmul.mubr.msk.bf16.gmra.mrb[4].mxu0 %vm221_vm1, %v4116_v5  ;;  %v4131_v5 = vld [vmem:[%s5564_s27 + $0x8] sm:$0xff]  }
  0x16   :  { %3784 = vmatprep.mubr.msk.bf16.mxu0 %vm221_vm1, %v4117_v6  ;;  %v2201_v6 = vld [vmem:[%s5538_s10] sm:$0x1] }
  0x1d   :  { %3785 = vmatmul.mubr.msk.bf16.gmra.mrb[8].mxu0 %vm221_vm1, %v4118_v7  ;;  %v4138_v7 = vld [vmem:[%s5540_s7] sm:$0xff]  }
  0x1e   :  { %3788 = vmatprep.mubr.msk.bf16.mxu0 %vm221_vm1, %v4119_v8  ;;  %v4139_v8 = vld [vmem:[%s5540_s7 + $0x8] sm:$0xff]   ;;  %s4441_s7 = smov 96  }
  0x25   :  { %3789 = vmatmul.mubr.msk.bf16.gmra.mrb[12].mxu0 %vm221_vm1, %v4120_v9  ;;  %v4715_v9 = vld [vmem:[%s5541_s4] ss:$0 sm:$0xff] }
  0x26   :  { %3792 = vmatprep.mubr.msk.bf16.mxu0 %vm221_vm1, %v4121_v10 }
  0x2d   :  { %3793 = vmatmul.mubr.msk.bf16.gmra.mrb[16].mxu0 %vm221_vm1, %v4122_v11 }
  0x2e   :  { %3796 = vmatprep.mubr.msk.bf16.mxu0 %vm221_vm1, %v4123_v12 }
  0x35   :  { %3797 = vmatmul.mubr.msk.bf16.gmra.mrb[20].mxu0 %vm221_vm1, %v4124_v13 }
  0x36   :  { %3800 = vmatprep.mubr.msk.bf16.mxu0 %vm221_vm1, %v4125_v14 }
  0x3d   :  { %3801 = vmatmul.mubr.msk.bf16.gmra.mrb[24].mxu0 %vm221_vm1, %v4126_v15 }
  0x3e   :  { %3804 = vmatprep.mubr.msk.bf16.mxu0 %vm221_vm1, %v4127_v16 }
  0x45   :  { %3805 = vmatmul.mubr.msk.bf16.gmra.mrb[28].mxu0 %vm221_vm1, %v4128_v17 }
  0x46   :  { %3858 = vmatprep.mubr.msk.bf16.mxu0 %vm4440_vm2, %v4439_v18 }
  0xe0   :  { %v3778_v19 = vpop.f32.mrb[0].mxu0 }
  0xe1   :  { %v308_v20 = vpop.f32.mrb[1].mxu0 }
  0xe2   :  { %v3779_v21 = vpop.f32.mrb[2].mxu0 }
  0xe3   :  { %v436_v22 = vpack.c.bf16 %v3779_v21, %v3778_v19  ;;  %v311_v23 = vpop.f32.mrb[3].mxu0 }
  0xe4   :  { %v435_v24 = vpack.c.bf16 %v311_v23, %v308_v20 }
  0xe6   :  { %3809 = vmatpush3.bf16.msra.mxu1 %v435_v24 }
  0xe7   :  { %3814 = vmatprep.subr.bf16.mxu1 %v4439_v18 }
  0xe8   :  { %v3782_v26 = vpop.f32.mrb[4].mxu0 }
  0xe9   :  { %3811 = vmatmul.mubr.msk.bf16.vlgmr.msra.gmra.mrb[0].mxu1 %vm456_vm3, %v4620_v25  ;;  %v324_v27 = vpop.f32.mrb[5].mxu0 }
  0xea   :  { %3815 = vmatpush3.bf16.msra.mxu1 %v436_v22  ;;  %v3783_v28 = vpop.f32.mrb[6].mxu0  ;;  %3816 = vmatprep.mubr.msk.bf16.mxu1 %vm4440_vm2, %v4439_v18 }
  0xeb   :  { %v438_v29 = vpack.c.bf16 %v3783_v28, %v3782_v26  ;;  %v327_v30 = vpop.f32.mrb[7].mxu0  ;;  %3820 = vmatprep.subr.bf16.mxu1 %v4439_v18  ;;  %v2296_v26 = vsel %vm2294_vm4, %v2201_v6, 0 }
  0xec   :  { %v437_v31 = vpack.c.bf16 %v327_v30, %v324_v27 }
  0xf0   :  { %v3786_v32 = vpop.f32.mrb[8].mxu0 }
  0xf1   :  { %3817 = vmatmul.mubr.msk.bf16.vlgmr.msra.gmra.mrb[4].mxu1 %vm456_vm3, %v4620_v25  ;;  %v340_v33 = vpop.f32.mrb[9].mxu0 }
  0xf2   :  { %3821 = vmatpush3.bf16.msra.mxu1 %v437_v31  ;;  %3822 = vmatprep.mubr.msk.bf16.mxu1 %vm4440_vm2, %v4439_v18  ;;  %v3787_v34 = vpop.f32.mrb[10].mxu0 }
  0xf3   :  { %3826 = vmatprep.subr.bf16.mxu1 %v4439_v18  ;;  %v440_v35 = vpack.c.bf16 %v3787_v34, %v3786_v32  ;;  %v343_v36 = vpop.f32.mrb[11].mxu0 }
  0xf4   :  { %v439_v37 = vpack.c.bf16 %v343_v36, %v340_v33 }
  0xf8   :  { %v3790_v38 = vpop.f32.mrb[12].mxu0 }
  0xf9   :  { %3823 = vmatmul.mubr.msk.bf16.vlgmr.msra.gmra.mrb[8].mxu1 %vm456_vm3, %v4620_v25  ;;  %v356_v39 = vpop.f32.mrb[13].mxu0 }
  0xfa   :  { %3827 = vmatpush3.bf16.msra.mxu1 %v438_v29  ;;  %3828 = vmatprep.mubr.msk.bf16.mxu1 %vm4440_vm2, %v4439_v18  ;;  %v3791_v40 = vpop.f32.mrb[14].mxu0 }
  0xfb   :  { %3832 = vmatprep.subr.bf16.mxu1 %v4439_v18  ;;  %v442_v41 = vpack.c.bf16 %v3791_v40, %v3790_v38  ;;  %v359_v42 = vpop.f32.mrb[15].mxu0 }
  0xfc   :  { %v441_v43 = vpack.c.bf16 %v359_v42, %v356_v39 }
 0x100   :  { %v3794_v44 = vpop.f32.mrb[16].mxu0 }
 0x101   :  { %3829 = vmatmul.mubr.msk.bf16.vlgmr.msra.gmra.mrb[12].mxu1 %vm456_vm3, %v4620_v25  ;;  %v372_v45 = vpop.f32.mrb[17].mxu0 }
 0x102   :  { %3833 = vmatpush3.bf16.msra.mxu1 %v439_v37  ;;  %3834 = vmatprep.mubr.msk.bf16.mxu1 %vm4440_vm2, %v4439_v18  ;;  %v3795_v46 = vpop.f32.mrb[18].mxu0 }
 0x103   :  { %3838 = vmatprep.subr.bf16.mxu1 %v4439_v18  ;;  %v444_v47 = vpack.c.bf16 %v3795_v46, %v3794_v44  ;;  %v375_v48 = vpop.f32.mrb[19].mxu0 }
 0x104   :  { %v443_v49 = vpack.c.bf16 %v375_v48, %v372_v45 }
 0x106   :  { %3857 = vmatpush3.bf16.msra.mxu0 %v443_v49 }
 0x107   :  { %3868 = vmatprep.subr.bf16.mxu0 %v4439_v18 }
 0x108   :  { %v3798_v50 = vpop.f32.mrb[20].mxu0 }
 0x109   :  { %3835 = vmatmul.mubr.msk.bf16.vlgmr.msra.gmra.mrb[16].mxu1 %vm456_vm3, %v4620_v25  ;;  %v388_v51 = vpop.f32.mrb[21].mxu0  ;;  %3859 = vmatmul.mubr.msk.bf16.vlgmr.msra.gmra.mrb[32].mxu0 %vm456_vm3, %v4620_v25 }
 0x10a   :  { %3839 = vmatpush3.bf16.msra.mxu1 %v440_v35  ;;  %3840 = vmatprep.mubr.msk.bf16.mxu1 %vm4440_vm2, %v4439_v18  ;;  %v3799_v52 = vpop.f32.mrb[22].mxu0 }
 0x10b   :  { %3844 = vmatprep.subr.bf16.mxu1 %v4439_v18  ;;  %v446_v53 = vpack.c.bf16 %v3799_v52, %v3798_v50  ;;  %v391_v54 = vpop.f32.mrb[23].mxu0  ;;  %3870 = vmatprep.mubr.msk.bf16.mxu0 %vm4440_vm2, %v4439_v18 }
 0x10c   :  { %v445_v55 = vpack.c.bf16 %v391_v54, %v388_v51 }
 0x10e   :  { %3869 = vmatpush3.bf16.msra.mxu0 %v445_v55 }
 0x10f   :  { %3880 = vmatprep.subr.bf16.mxu0 %v4439_v18 }
 0x110   :  { %v3802_v56 = vpop.f32.mrb[24].mxu0 }
 0x111   :  { %3841 = vmatmul.mubr.msk.bf16.vlgmr.msra.gmra.mrb[20].mxu1 %vm456_vm3, %v4620_v25  ;;  %v404_v57 = vpop.f32.mrb[25].mxu0  ;;  %3871 = vmatmul.mubr.msk.bf16.vlgmr.msra.gmra.mrb[36].mxu0 %vm456_vm3, %v4620_v25 }
 0x112   :  { %3845 = vmatpush3.bf16.msra.mxu1 %v441_v43  ;;  %3846 = vmatprep.mubr.msk.bf16.mxu1 %vm4440_vm2, %v4439_v18  ;;  %v3803_v58 = vpop.f32.mrb[26].mxu0 }
 0x113   :  { %3850 = vmatprep.subr.bf16.mxu1 %v4439_v18  ;;  %v448_v59 = vpack.c.bf16 %v3803_v58, %v3802_v56  ;;  %v407_v60 = vpop.f32.mrb[27].mxu0  ;;  %3882 = vmatprep.mubr.msk.bf16.mxu0 %vm4440_vm2, %v4439_v18 }
 0x114   :  { %v447_v61 = vpack.c.bf16 %v407_v60, %v404_v57 }
 0x116   :  { %3881 = vmatpush3.bf16.msra.mxu0 %v447_v61 }
 0x117   :  { %3892 = vmatprep.subr.bf16.mxu0 %v4439_v18 }
 0x118   :  { %v3806_v62 = vpop.f32.mrb[28].mxu0 }
 0x119   :  { %3847 = vmatmul.mubr.msk.bf16.vlgmr.msra.gmra.mrb[24].mxu1 %vm456_vm3, %v4620_v25  ;;  %v420_v63 = vpop.f32.mrb[29].mxu0  ;;  %3883 = vmatmul.mubr.msk.bf16.vlgmr.msra.gmra.mrb[40].mxu0 %vm456_vm3, %v4620_v25 }
 0x11a   :  { %3851 = vmatpush3.bf16.msra.mxu1 %v442_v41  ;;  %3852 = vmatprep.mubr.msk.bf16.mxu1 %vm4440_vm2, %v4439_v18  ;;  %v3807_v0 = vpop.f32.mrb[30].mxu0 }
 0x11b   :  { %3862 = vmatprep.subr.bf16.mxu1 %v4439_v18  ;;  %v450_v1 = vpack.c.bf16 %v3807_v0, %v3806_v62  ;;  %v423_v2 = vpop.f32.mrb[31].mxu0  ;;  %3894 = vmatprep.mubr.msk.bf16.mxu0 %vm4440_vm2, %v4439_v18 }
 0x11c   :  { %v449_v3 = vpack.c.bf16 %v423_v2, %v420_v63 }
 0x11e   :  { %3893 = vmatpush3.bf16.msra.mxu0 %v449_v3 }
 0x11f   :  { %3904 = vmatprep.subr.bf16.mxu0 %v4130_v4 }
 0x121   :  { %3853 = vmatmul.mubr.msk.bf16.vlgmr.msra.gmra.mrb[28].mxu1 %vm456_vm3, %v4620_v25  ;;  %3895 = vmatmul.mubr.msk.bf16.vlgmr.msra.gmra.mrb[44].mxu0 %vm456_vm3, %v4620_v25 }
 0x122   :  { %3863 = vmatpush3.bf16.msra.mxu1 %v444_v47  ;;  %3864 = vmatprep.mubr.msk.bf16.mxu1 %vm4440_vm2, %v4439_v18 }
 0x123   :  { %3874 = vmatprep.subr.bf16.mxu1 %v4439_v18  ;;  %3905 = vmatpush3.bf16.msra.mxu0 %v4130_v4 }
 0x124   :  { %3906 = vmatprep.subr.bf16.mxu0 %v4131_v5 }
 0x127   :  { %3907 = vmatpush3.bf16.msra.mxu0 %v4131_v5 }
 0x128   :  { %4095 = vmatprep.subr.msk.bf16.mxu0 %vm2294_vm4, %v2201_v6 }
 0x129   :  { %3865 = vmatmul.mubr.msk.bf16.vlgmr.msra.gmra.mrb[32].mxu1 %vm456_vm3, %v4620_v25 }
 0x12a   :  { %3875 = vmatpush3.bf16.msra.mxu1 %v446_v53  ;;  %3876 = vmatprep.mubr.msk.bf16.mxu1 %vm4440_vm2, %v4439_v18 }
 0x12b   :  { %3886 = vmatprep.subr.bf16.mxu1 %v4439_v18 }
 0x131   :  { %3877 = vmatmul.mubr.msk.bf16.vlgmr.msra.gmra.mrb[36].mxu1 %vm456_vm3, %v4620_v25 }
 0x132   :  { %3887 = vmatpush3.bf16.msra.mxu1 %v448_v59  ;;  %3888 = vmatprep.mubr.msk.bf16.mxu1 %vm4440_vm2, %v4439_v18 }
 0x133   :  { %3898 = vmatprep.subr.bf16.mxu1 %v4439_v18 }
 0x139   :  { %3889 = vmatmul.mubr.msk.bf16.vlgmr.msra.gmra.mrb[40].mxu1 %vm456_vm3, %v4620_v25 }
 0x13a   :  { %3899 = vmatpush3.bf16.msra.mxu1 %v450_v1  ;;  %3900 = vmatprep.mubr.msk.bf16.mxu1 %vm4440_vm2, %v4439_v18 }
 0x13b   :  { %3940 = vmatprep.subr.bf16.mxu1 %v4138_v7 }
 0x141   :  { %3901 = vmatmul.mubr.msk.bf16.vlgmr.msra.gmra.mrb[44].mxu1 %vm456_vm3, %v4620_v25 }
 0x142   :  { %3941 = vmatpush3.bf16.msra.mxu1 %v4138_v7 }
 0x143   :  { %3942 = vmatprep.subr.bf16.mxu1 %v4139_v8 }
 0x146   :  { %3943 = vmatpush3.bf16.msra.mxu1 %v4139_v8 }
 0x147   :  { %3994 = vmatprep.subr.bf16.mxu1 %v4439_v18 }
 0x1bc   :  { %v494_v10 = vpop.f32.mrb[0].mxu1 }
 0x1bd   :  { %v3812_v11 = vpop.f32.mrb[1].mxu1  ;;  %v1122_v13 = vadd.f32 %v4715_v9, %v494_v10 }
 0x1be   :  { %v497_v12 = vpop.f32.mrb[2].mxu1 }
 0x1bf   :  { %v1123_v14 = vadd.f32 %v4715_v9, %v497_v12  ;;  %v3813_v15 = vpop.f32.mrb[3].mxu1 }
 0x1c1   :  { %v1154_v16 = vpack.c.bf16 %v1123_v14, %v1122_v13 }
 0x1c3   :  { %1612 = vrot.lane.b32.xlu0 %v1154_v16, %s4441_s7  ;;  %3908 = vmatprep.mubr.msk.bf16.mxu0 %vm1188_vm5, %v1154_v16 }
 0x1c4   :  { %v535_v17 = vpop.f32.mrb[4].mxu1 }
 0x1c5   :  { %v3818_v19 = vpop.f32.mrb[5].mxu1  ;;  %v1124_v21 = vadd.f32 %v4715_v9, %v535_v17 }
 0x1c6   :  { %v538_v20 = vpop.f32.mrb[6].mxu1 }
 0x1c7   :  { %v1125_v22 = vadd.f32 %v4715_v9, %v538_v20  ;;  %v3819_v23 = vpop.f32.mrb[7].mxu1 }
 0x1c9   :  { %v1155_v24 = vpack.c.bf16 %v1125_v22, %v1124_v21 }
 0x1cb   :  { %1614 = vrot.lane.b32.xlu0 %v1155_v24, %s4441_s7  ;;  %3909 = vmatmul.mubr.msk.bf16.vlgmr.msra.gmra.mrb[48].mxu0 %vm1188_vm5, %v1155_v24 }
 0x1cc   :  { %v576_v27 = vpop.f32.mrb[8].mxu1  ;;  %3977 = vmatpush3.bf16.msra.mxu0 %v2296_v26 }
 0x1cd   :  { %v3824_v28 = vpop.f32.mrb[9].mxu1  ;;  %4018 = vmatprep.subr.bf16.mxu0 %v4439_v18  ;;  %v1126_v30 = vadd.f32 %v4715_v9, %v576_v27 }
 0x1ce   :  { %v579_v29 = vpop.f32.mrb[10].mxu1 }
 0x1cf   :  { %v1127_v31 = vadd.f32 %v4715_v9, %v579_v29  ;;  %v3825_v32 = vpop.f32.mrb[11].mxu1 }
 0x1d1   :  { %v1156_v33 = vpack.c.bf16 %v1127_v31, %v1126_v30 }
 0x1d3   :  { %1616 = vrot.lane.b32.xlu1 %v1156_v33, %s4441_s7  ;;  %3912 = vmatprep.mubr.msk.bf16.mxu0 %vm1188_vm5, %v1156_v33 }
 0x1d4   :  { %v617_v34 = vpop.f32.mrb[12].mxu1 }
 0x1d5   :  { %v3830_v35 = vpop.f32.mrb[13].mxu1  ;;  %v1128_v37 = vadd.f32 %v4715_v9, %v617_v34 }
 0x1d6   :  { %v620_v36 = vpop.f32.mrb[14].mxu1 }
 0x1d7   :  { %v1129_v38 = vadd.f32 %v4715_v9, %v620_v36  ;;  %v3831_v39 = vpop.f32.mrb[15].mxu1 }
 0x1d9   :  { %v1157_v40 = vpack.c.bf16 %v1129_v38, %v1128_v37 }
 0x1db   :  { %1618 = vrot.lane.b32.xlu1 %v1157_v40, %s4441_s7  ;;  %3913 = vmatmul.mubr.msk.bf16.gmra.mrb[52].mxu0 %vm1188_vm5, %v1157_v40 }
 0x1dc   :  { %v658_v41 = vpop.f32.mrb[16].mxu1  ;;  %v822_v42 = vpop.f32.mrb[32].mxu0 }
 0x1dd   :  { %v3836_v43 = vpop.f32.mrb[17].mxu1  ;;  %v1138_v44 = vadd.f32 %v4715_v9, %v822_v42  ;;  %v3860_v45 = vpop.f32.mrb[33].mxu0  ;;  %v1130_v48 = vadd.f32 %v4715_v9, %v658_v41 }
 0x1de   :  { %v661_v46 = vpop.f32.mrb[18].mxu1  ;;  %v825_v47 = vpop.f32.mrb[34].mxu0 }
 0x1df   :  { %v1131_v49 = vadd.f32 %v4715_v9, %v661_v46  ;;  %v3837_v50 = vpop.f32.mrb[19].mxu1  ;;  %v1139_v51 = vadd.f32 %v4715_v9, %v825_v47  ;;  %v3861_v52 = vpop.f32.mrb[35].mxu0 }
 0x1e1   :  { %v1158_v53 = vpack.c.bf16 %v1131_v49, %v1130_v48  ;;  %v1162_v54 = vpack.c.bf16 %v1139_v51, %v1138_v44 }
 0x1e3   :  { %1620 = vrot.lane.b32.xlu0 %v1158_v53, %s4441_s7  ;;  %3916 = vmatprep.mubr.msk.bf16.mxu0 %vm1188_vm5, %v1158_v53 }
 0x1e4   :  { %v699_v55 = vpop.f32.mrb[20].mxu1  ;;  %v904_v56 = vpop.f32.mrb[36].mxu0 }
 0x1e5   :  { %v3842_v57 = vpop.f32.mrb[21].mxu1  ;;  %v1142_v58 = vadd.f32 %v4715_v9, %v904_v56  ;;  %v3872_v59 = vpop.f32.mrb[37].mxu0  ;;  %v1132_v62 = vadd.f32 %v4715_v9, %v699_v55 }
 0x1e6   :  { %v702_v60 = vpop.f32.mrb[22].mxu1  ;;  %v907_v61 = vpop.f32.mrb[38].mxu0 }
 0x1e7   :  { %v1133_v63 = vadd.f32 %v4715_v9, %v702_v60  ;;  %v3843_v0 = vpop.f32.mrb[23].mxu1  ;;  %v1143_v1 = vadd.f32 %v4715_v9, %v907_v61  ;;  %v3873_v2 = vpop.f32.mrb[39].mxu0 }
 0x1e8   :  { %v4135_v2 = vld [vmem:[%s5539_s1 + $0x18] sm:$0xff]  }
 0x1e9   :  { %v1159_v3 = vpack.c.bf16 %v1133_v63, %v1132_v62  ;;  %v1164_v4 = vpack.c.bf16 %v1143_v1, %v1142_v58  ;;  %v4132_v63 = vld [vmem:[%s5539_s1] sm:$0xff]   ;;  %v4133_v1 = vld [vmem:[%s5539_s1 + $0x8] sm:$0xff]  }
 0x1eb   :  { %1622 = vrot.lane.b32.xlu1 %v1159_v3, %s4441_s7  ;;  %3917 = vmatmul.mubr.msk.bf16.gmra.mrb[56].mxu0 %vm1188_vm5, %v1159_v3  ;;  %v4136_v3 = vld [vmem:[%s5539_s1 + $0x20] sm:$0xff]  }
 0x1ec   :  { %v740_v5 = vpop.f32.mrb[24].mxu1  ;;  %v986_v6 = vpop.f32.mrb[40].mxu0 }
 0x1ed   :  { %v3848_v7 = vpop.f32.mrb[25].mxu1  ;;  %v1146_v8 = vadd.f32 %v4715_v9, %v986_v6  ;;  %v3884_v10 = vpop.f32.mrb[41].mxu0  ;;  %v1134_v13 = vadd.f32 %v4715_v9, %v740_v5  ;;  %v4140_v5 = vld [vmem:[%s5539_s1 + $0x30] sm:$0xff]  }
 0x1ee   :  { %v743_v11 = vpop.f32.mrb[26].mxu1  ;;  %v989_v12 = vpop.f32.mrb[42].mxu0  ;;  %v4141_v7 = vld [vmem:[%s5539_s1 + $0x38] sm:$0xff]  }
 0x1ef   :  { %v1135_v14 = vadd.f32 %v4715_v9, %v743_v11  ;;  %v3849_v15 = vpop.f32.mrb[27].mxu1  ;;  %v1147_v16 = vadd.f32 %v4715_v9, %v989_v12  ;;  %v3885_v17 = vpop.f32.mrb[43].mxu0 }
 0x1f1   :  { %v1160_v19 = vpack.c.bf16 %v1135_v14, %v1134_v13  ;;  %v1166_v20 = vpack.c.bf16 %v1147_v16, %v1146_v8 }
 0x1f3   :  { %1624 = vrot.lane.b32.xlu0 %v1160_v19, %s4441_s7  ;;  %3920 = vmatprep.mubr.msk.bf16.mxu0 %vm1188_vm5, %v1160_v19 }
 0x1f4   :  { %v781_v21 = vpop.f32.mrb[28].mxu1  ;;  %v1068_v22 = vpop.f32.mrb[44].mxu0 }
 0x1f5   :  { %v3854_v23 = vpop.f32.mrb[29].mxu1  ;;  %v1150_v24 = vadd.f32 %v4715_v9, %v1068_v22  ;;  %v3896_v26 = vpop.f32.mrb[45].mxu0  ;;  %v1136_v29 = vadd.f32 %v4715_v9, %v781_v21 }
 0x1f6   :  { %v784_v27 = vpop.f32.mrb[30].mxu1  ;;  %v1071_v28 = vpop.f32.mrb[46].mxu0 }
 0x1f7   :  { %v1137_v30 = vadd.f32 %v4715_v9, %v784_v27  ;;  %v3855_v31 = vpop.f32.mrb[31].mxu1  ;;  %1628 = vrot.lane.b32.xlu0 %v1162_v54, %s4441_s7  ;;  %v1151_v32 = vadd.f32 %v4715_v9, %v1071_v28  ;;  %v3897_v33 = vpop.f32.mrb[47].mxu0 }
 0x1f9   :  { %v1161_v34 = vpack.c.bf16 %v1137_v30, %v1136_v29  ;;  %v1168_v35 = vpack.c.bf16 %v1151_v32, %v1150_v24 }
 0x1fb   :  { %1626 = vrot.lane.b32.xlu1 %v1161_v34, %s4441_s7  ;;  %3921 = vmatmul.mubr.msk.bf16.gmra.mrb[60].mxu0 %vm1188_vm5, %v1161_v34 }
 0x1fc   :  { %v863_v36 = vpop.f32.mrb[32].mxu1  ;;  %3924 = vmatprep.mubr.msk.bf16.mxu0 %vm1188_vm5, %v1162_v54  ;;  %1632 = vrot.lane.b32.xlu0 %v1164_v4, %s4441_s7 }
 0x1fd   :  { %v3866_v37 = vpop.f32.mrb[33].mxu1  ;;  %v1140_v39 = vadd.f32 %v4715_v9, %v863_v36 }
 0x1fe   :  { %v866_v38 = vpop.f32.mrb[34].mxu1 }
 0x1ff   :  { %v1141_v40 = vadd.f32 %v4715_v9, %v866_v38  ;;  %v3867_v41 = vpop.f32.mrb[35].mxu1 }
 0x200   :  { %1636 = vrot.lane.b32.xlu0 %v1166_v20, %s4441_s7 }
 0x201   :  { %v1163_v42 = vpack.c.bf16 %v1141_v40, %v1140_v39 }
 0x203   :  { %1630 = vrot.lane.b32.xlu1 %v1163_v42, %s4441_s7  ;;  %3925 = vmatmul.mubr.msk.bf16.gmra.mrb[64].mxu0 %vm1188_vm5, %v1163_v42 }
 0x204   :  { %v945_v43 = vpop.f32.mrb[36].mxu1  ;;  %3928 = vmatprep.mubr.msk.bf16.mxu0 %vm1188_vm5, %v1164_v4  ;;  %1640 = vrot.lane.b32.xlu0 %v1168_v35, %s4441_s7  ;;  %v4137_v4 = vld [vmem:[%s5539_s1 + $0x28] sm:$0xff]  }
 0x205   :  { %v3878_v44 = vpop.f32.mrb[37].mxu1  ;;  %v1144_v46 = vadd.f32 %v4715_v9, %v945_v43 }
 0x206   :  { %v948_v45 = vpop.f32.mrb[38].mxu1 }
 0x207   :  { %v1145_v47 = vadd.f32 %v4715_v9, %v948_v45  ;;  %v3879_v48 = vpop.f32.mrb[39].mxu1 }
 0x209   :  { %v1165_v49 = vpack.c.bf16 %v1145_v47, %v1144_v46 }
 0x20b   :  { %1634 = vrot.lane.b32.xlu1 %v1165_v49, %s4441_s7  ;;  %3929 = vmatmul.mubr.msk.bf16.gmra.mrb[68].mxu0 %vm1188_vm5, %v1165_v49 }
 0x20c   :  { %v1027_v50 = vpop.f32.mrb[40].mxu1  ;;  %3932 = vmatprep.mubr.msk.bf16.mxu0 %vm1188_vm5, %v1166_v20 }
 0x20d   :  { %v3890_v51 = vpop.f32.mrb[41].mxu1  ;;  %v1148_v53 = vadd.f32 %v4715_v9, %v1027_v50 }
 0x20e   :  { %v1030_v52 = vpop.f32.mrb[42].mxu1 }
 0x20f   :  { %v1149_v54 = vadd.f32 %v4715_v9, %v1030_v52  ;;  %v3891_v55 = vpop.f32.mrb[43].mxu1 }
 0x211   :  { %v1167_v56 = vpack.c.bf16 %v1149_v54, %v1148_v53 }
 0x213   :  { %1638 = vrot.lane.b32.xlu1 %v1167_v56, %s4441_s7  ;;  %3933 = vmatmul.mubr.msk.bf16.gmra.mrb[72].mxu0 %vm1188_vm5, %v1167_v56 }
 0x214   :  { %v1109_v57 = vpop.f32.mrb[44].mxu1  ;;  %3936 = vmatprep.mubr.msk.bf16.mxu0 %vm1188_vm5, %v1168_v35 }
 0x215   :  { %v3902_v58 = vpop.f32.mrb[45].mxu1  ;;  %v1152_v60 = vadd.f32 %v4715_v9, %v1109_v57 }
 0x216   :  { %v1112_v59 = vpop.f32.mrb[46].mxu1  ;;  %v4889_v58 = vld [vmem:[%s5542_s6] ss:$0 sm:$0xff] }
 0x217   :  { %v1153_v61 = vadd.f32 %v4715_v9, %v1112_v59  ;;  %v3903_v62 = vpop.f32.mrb[47].mxu1  ;;  %v4134_v9 = vld [vmem:[%s5539_s1 + $0x10] sm:$0xff]  }
 0x219   :  { %v1169_v0 = vpack.c.bf16 %v1153_v61, %v1152_v60 }
 0x21b   :  { %1642 = vrot.lane.b32.xlu1 %v1169_v0, %s4441_s7  ;;  %3937 = vmatmul.mubr.msk.bf16.gmra.mrb[76].mxu0 %vm1188_vm5, %v1169_v0 }
 0x21c   :  { %3978 = vmatprep.mubr.msk.bf16.mxu0 %vm2269_vm6, %v4132_v63 }
 0x223   :  { %3979 = vmatmul.mubr.msk.bf16.vlgmr.msra.gmra.mrb[80].mxu0 %vm2269_vm6, %v4133_v1 }
 0x224   :  { %3982 = vmatprep.mubr.msk.bf16.mxu0 %vm2269_vm6, %v4134_v9 }
 0x22b   :  { %3983 = vmatmul.mubr.msk.bf16.gmra.mrb[84].mxu0 %vm2269_vm6, %v4135_v2 }
 0x22c   :  { %3986 = vmatprep.mubr.msk.bf16.mxu0 %vm2269_vm6, %v4136_v3 }
 0x233   :  { %3987 = vmatmul.mubr.msk.bf16.gmra.mrb[88].mxu0 %vm2269_vm6, %v4137_v4 }
 0x234   :  { %3990 = vmatprep.mubr.msk.bf16.mxu0 %vm2269_vm6, %v4140_v5 }
 0x235   :  { %v1613_v6 = vpop.permute.xlu0 %1612 }
 0x236   :  { %3944 = vmatprep.mubr.msk.bf16.mxu1 %vm1188_vm5, %v1613_v6 }
 0x23b   :  { %3991 = vmatmul.mubr.msk.bf16.gmra.mrb[92].mxu0 %vm2269_vm6, %v4141_v7 }
 0x23c   :  { %4020 = vmatprep.mubr.msk.bf16.mxu0 %vm4440_vm2, %v4439_v18 }
 0x23d   :  { %v1615_v8 = vpop.permute.xlu0 %1614 }
 0x23e   :  { %3945 = vmatmul.mubr.msk.bf16.vlgmr.msra.gmra.mrb[48].mxu1 %vm1188_vm5, %v1615_v8 }
 0x245   :  { %v1617_v10 = vpop.permute.xlu1 %1616 }
 0x246   :  { %3948 = vmatprep.mubr.msk.bf16.mxu1 %vm1188_vm5, %v1617_v10 }
 0x24d   :  { %v1619_v11 = vpop.permute.xlu1 %1618 }
 0x24e   :  { %3949 = vmatmul.mubr.msk.bf16.gmra.mrb[52].mxu1 %vm1188_vm5, %v1619_v11 }
 0x255   :  { %v1621_v12 = vpop.permute.xlu0 %1620 }
 0x256   :  { %3952 = vmatprep.mubr.msk.bf16.mxu1 %vm1188_vm5, %v1621_v12 }
 0x25d   :  { %v1623_v13 = vpop.permute.xlu1 %1622 }
 0x25e   :  { %3953 = vmatmul.mubr.msk.bf16.gmra.mrb[56].mxu1 %vm1188_vm5, %v1623_v13 }
 0x265   :  { %v1625_v14 = vpop.permute.xlu0 %1624 }
 0x266   :  { %3956 = vmatprep.mubr.msk.bf16.mxu1 %vm1188_vm5, %v1625_v14 }
 0x269   :  { %v1629_v15 = vpop.permute.xlu0 %1628 }
 0x26d   :  { %v1627_v16 = vpop.permute.xlu1 %1626 }
 0x26e   :  { %3957 = vmatmul.mubr.msk.bf16.gmra.mrb[60].mxu1 %vm1188_vm5, %v1627_v16  ;;  %v1633_v17 = vpop.permute.xlu0 %1632 }
 0x26f   :  { %3960 = vmatprep.mubr.msk.bf16.mxu1 %vm1188_vm5, %v1629_v15 }
 0x272   :  { %v1637_v20 = vpop.permute.xlu0 %1636 }
 0x275   :  { %v1631_v19 = vpop.permute.xlu1 %1630 }
 0x276   :  { %3961 = vmatmul.mubr.msk.bf16.gmra.mrb[64].mxu1 %vm1188_vm5, %v1631_v19  ;;  %v1641_v22 = vpop.permute.xlu0 %1640 }
 0x277   :  { %3964 = vmatprep.mubr.msk.bf16.mxu1 %vm1188_vm5, %v1633_v17 }
 0x27d   :  { %v1635_v21 = vpop.permute.xlu1 %1634 }
 0x27e   :  { %3965 = vmatmul.mubr.msk.bf16.gmra.mrb[68].mxu1 %vm1188_vm5, %v1635_v21 }
 0x27f   :  { %3968 = vmatprep.mubr.msk.bf16.mxu1 %vm1188_vm5, %v1637_v20 }
 0x285   :  { %v1639_v23 = vpop.permute.xlu1 %1638 }
 0x286   :  { %3969 = vmatmul.mubr.msk.bf16.gmra.mrb[72].mxu1 %vm1188_vm5, %v1639_v23 }
 0x287   :  { %3972 = vmatprep.mubr.msk.bf16.mxu1 %vm1188_vm5, %v1641_v22 }
 0x28d   :  { %v1643_v24 = vpop.permute.xlu1 %1642 }
 0x28e   :  { %3973 = vmatmul.mubr.msk.bf16.gmra.mrb[76].mxu1 %vm1188_vm5, %v1643_v24 }
 0x28f   :  { %3996 = vmatprep.mubr.msk.bf16.mxu1 %vm4440_vm2, %v4439_v18 }
 0x29e   :  { %v3910_v26 = vpop.f32.mrb[48].mxu0 }
 0x29f   :  { %v1271_v27 = vpop.f32.mrb[49].mxu0  ;;  %v1280_v59 = vadd.f32 %v3910_v26, %v4889_v58 }
 0x2a0   :  { %v3911_v28 = vpop.f32.mrb[50].mxu0  ;;  %v1272_v61 = vadd.f32 %v4889_v58, %v1271_v27 }
 0x2a1   :  { %v1274_v29 = vpop.f32.mrb[51].mxu0  ;;  %v1283_v63 = vadd.f32 %v3911_v28, %v4889_v58  ;;  %v3519_v2 = vmul.f32 -1.442695, %v1280_v59 }
 0x2a2   :  { %v1275_v3 = vadd.f32 %v4889_v58, %v1274_v29  ;;  %v3517_v5 = vmul.f32 -1.442695, %v1272_v61 }
 0x2a3   :  { %v3520_v6 = vmul.f32 -1.442695, %v1283_v63  ;;  %4150 = vpow2.f32 %v3519_v2 }
 0x2a4   :  { %v3518_v7 = vmul.f32 -1.442695, %v1275_v3  ;;  %4152 = vpow2.f32 %v3517_v5 }
 0x2a5   :  { %4154 = vpow2.f32 %v3520_v6 }
 0x2a6   :  { %4156 = vpow2.f32 %v3518_v7 }
 0x2ad   :  { %v4151_v24 = vpop.eup %4150 }
 0x2ae   :  { %v3914_v30 = vpop.f32.mrb[52].mxu0  ;;  %v4153_v27 = vpop.eup %4152  ;;  %v1496_v59 = vadd.f32 1.0, %v4151_v24 }
 0x2af   :  { %v1287_v31 = vpop.f32.mrb[53].mxu0  ;;  %v1296_v10 = vadd.f32 %v3914_v30, %v4889_v58  ;;  %v4155_v30 = vpop.eup %4154  ;;  %v1494_v61 = vadd.f32 1.0, %v4153_v27 }
 0x2b0   :  { %v3915_v32 = vpop.f32.mrb[54].mxu0  ;;  %v1288_v12 = vadd.f32 %v4889_v58, %v1287_v31 }
 0x2b1   :  { %v4836_v33 = vpop.f32.mrb[55].mxu0  ;;  %v1299_v14 = vadd.f32 %v3915_v32, %v4889_v58  ;;  %v3523_v19 = vmul.f32 -1.442695, %v1296_v10 }
 0x2b2   :  { %v3521_v20 = vmul.f32 -1.442695, %v1288_v12  ;;  %v1291_v31 = vadd.f32 %v4889_v58, %v4836_v33  ;;  %v4927_v33 = vld [vmem:[%s5543_s8] ss:$0 sm:$0xff] }
 0x2b3   :  { %v3524_v21 = vmul.f32 -1.442695, %v1299_v14  ;;  %4158 = vpow2.f32 %v3523_v19 }
 0x2b4   :  { %4160 = vpow2.f32 %v3521_v20  ;;  %v3522_v63 = vmul.f32 -1.442695, %v1291_v31 }
 0x2b5   :  { %4162 = vpow2.f32 %v3524_v21 }
 0x2b6   :  { %4164 = vrcp.f32 %v1496_v59 }
 0x2b7   :  { %4166 = vrcp.f32 %v1494_v61 }
 0x2be   :  { %v4838_v34 = vpop.f32.mrb[56].mxu0 }
 0x2bf   :  { %v4840_v35 = vpop.f32.mrb[57].mxu0 }
 0x2c0   :  { %v4842_v36 = vpop.f32.mrb[58].mxu0 }
 0x2c1   :  { %v4844_v37 = vpop.f32.mrb[59].mxu0 }
 0x2c2   :  { %v1307_v27 = vadd.f32 %v4889_v58, %v4844_v37 }
 0x2ce   :  { %v4846_v38 = vpop.f32.mrb[60].mxu0 }
 0x2cf   :  { %v4848_v39 = vpop.f32.mrb[61].mxu0 }
 0x2d0   :  { %v4850_v40 = vpop.f32.mrb[62].mxu0 }
 0x2d1   :  { %v4852_v41 = vpop.f32.mrb[63].mxu0  ;;  %v1331_v31 = vadd.f32 %v4850_v40, %v4889_v58 }
 0x2d3   :  { %v3532_v61 = vmul.f32 -1.442695, %v1331_v31 }
 0x2d6   :  { %v4854_v42 = vpop.f32.mrb[64].mxu0 }
 0x2d7   :  { %v4856_v43 = vpop.f32.mrb[65].mxu0 }
 0x2d8   :  { %v4858_v44 = vpop.f32.mrb[66].mxu0 }
 0x2d9   :  { %v4860_v45 = vpop.f32.mrb[67].mxu0 }
 0x2de   :  { %v4862_v46 = vpop.f32.mrb[68].mxu0 }
 0x2df   :  { %v4864_v47 = vpop.f32.mrb[69].mxu0 }
 0x2e0   :  { %v4866_v48 = vpop.f32.mrb[70].mxu0 }
 0x2e1   :  { %v4868_v49 = vpop.f32.mrb[71].mxu0 }
 0x2e6   :  { %v4870_v50 = vpop.f32.mrb[72].mxu0 }
 0x2e7   :  { %v4872_v51 = vpop.f32.mrb[73].mxu0 }
 0x2e8   :  { %v4874_v52 = vpop.f32.mrb[74].mxu0 }
 0x2e9   :  { %v4876_v53 = vpop.f32.mrb[75].mxu0 }
 0x2ee   :  { %v4878_v54 = vpop.f32.mrb[76].mxu0 }
 0x2ef   :  { %v4880_v55 = vpop.f32.mrb[77].mxu0 }
 0x2f0   :  { %v4882_v56 = vpop.f32.mrb[78].mxu0 }
 0x2f1   :  { %v4884_v57 = vpop.f32.mrb[79].mxu0 }
 0x2f6   :  { %v3980_v60 = vpop.f32.mrb[80].mxu0 }
 0x2f7   :  { %v2332_v62 = vpop.f32.mrb[81].mxu0 }
 0x2f8   :  { %v3981_v0 = vpop.f32.mrb[82].mxu0 }
 0x2f9   :  { %v2396_v1 = vpack.c.bf16 %v3981_v0, %v3980_v60  ;;  %v2335_v9 = vpop.f32.mrb[83].mxu0  ;;  %v4157_v60 = vpop.eup %4156 }
 0x2fa   :  { %v2395_v4 = vpack.c.bf16 %v2335_v9, %v2332_v62  ;;  %v1497_v62 = vadd.f32 1.0, %v4155_v30  ;;  %v4159_v3 = vpop.eup %4158  ;;  %v1320_v30 = vadd.f32 %v4889_v58, %v4848_v39  ;;  %v1323_v39 = vadd.f32 %v4889_v58, %v4852_v41  ;;  %v4438_v41 = vld [vmem:[%s5563_s25] sm:$0xff]  }
 0x2fb   :  { %v4161_v7 = vpop.eup %4160 }
 0x2fc   :  { %3995 = vmatpush3.bf16.msra.mxu1 %v2395_v4  ;;  %4168 = vrcp.f32 %v1497_v62  ;;  %v4163_v12 = vpop.eup %4162  ;;  %v1498_v21 = vadd.f32 1.0, %v4161_v7  ;;  %v3530_v40 = vmul.f32 -1.442695, %v1323_v39 }
 0x2fd   :  { %4000 = vmatprep.subr.bf16.mxu1 %v4439_v18  ;;  %4170 = vpow2.f32 %v3522_v63  ;;  %v4165_v37 = vpop.eup %4164 }
 0x2fe   :  { %v3984_v8 = vpop.f32.mrb[84].mxu0  ;;  %v1899_v62 = vsub.f32 1.0, %v4165_v37 }
 0x2ff   :  { %3997 = vmatmul.mubr.msk.bf16.vlgmr.msra.gmra.mrb[80].mxu1 %vm456_vm3, %v4620_v25  ;;  %v2348_v11 = vpop.f32.mrb[85].mxu0 }
 0x300   :  { %4001 = vmatpush3.bf16.msra.mxu1 %v2396_v1  ;;  %v3985_v13 = vpop.f32.mrb[86].mxu0  ;;  %4002 = vmatprep.mubr.msk.bf16.mxu1 %vm4440_vm2, %v4439_v18  ;;  %v1495_v1 = vadd.f32 1.0, %v4157_v60 }
 0x301   :  { %v2398_v15 = vpack.c.bf16 %v3985_v13, %v3984_v8  ;;  %v2351_v16 = vpop.f32.mrb[87].mxu0  ;;  %4006 = vmatprep.subr.bf16.mxu1 %v4439_v18  ;;  %v1312_v13 = vadd.f32 %v4838_v34, %v4889_v58  ;;  %v1501_v34 = vadd.f32 1.0, %v4163_v12 }
 0x302   :  { %v2397_v17 = vpack.c.bf16 %v2351_v16, %v2348_v11  ;;  %4172 = vrcp.f32 %v1495_v1  ;;  %v1500_v16 = vadd.f32 1.0, %v4159_v3 }
 0x306   :  { %v4904_v22 = vpop.f32.mrb[88].mxu0 }
 0x307   :  { %v2364_v23 = vpop.f32.mrb[89].mxu0  ;;  %4003 = vmatmul.mubr.msk.bf16.vlgmr.msra.gmra.mrb[84].mxu1 %vm456_vm3, %v4620_v25 }
 0x308   :  { %v4908_v26 = vpop.f32.mrb[90].mxu0  ;;  %4007 = vmatpush3.bf16.msra.mxu1 %v2397_v17  ;;  %4008 = vmatprep.mubr.msk.bf16.mxu1 %vm4440_vm2, %v4439_v18  ;;  %v1304_v17 = vadd.f32 %v4889_v58, %v4840_v35  ;;  %v1328_v35 = vadd.f32 %v4846_v38, %v4889_v58 }
 0x309   :  { %v2400_v28 = vpack.c.bf16 %v4908_v26, %v4904_v22  ;;  %v2367_v29 = vpop.f32.mrb[91].mxu0  ;;  %4012 = vmatprep.subr.bf16.mxu1 %v4439_v18 }
 0x30a   :  { %v2399_v32 = vpack.c.bf16 %v2367_v29, %v2364_v23  ;;  %v1315_v23 = vadd.f32 %v4842_v36, %v4889_v58  ;;  %v3527_v29 = vmul.f32 -1.442695, %v1312_v13  ;;  %v3525_v36 = vmul.f32 -1.442695, %v1304_v17 }
 0x30b   :  { %v3531_v22 = vmul.f32 -1.442695, %v1328_v35  ;;  %v1336_v13 = vadd.f32 %v4889_v58, %v4856_v43  ;;  %v1339_v17 = vadd.f32 %v4889_v58, %v4860_v45 }
 0x30c   :  { %4019 = vmatpush3.bf16.msra.mxu0 %v2399_v32  ;;  %v3528_v38 = vmul.f32 -1.442695, %v1315_v23  ;;  %v3526_v32 = vmul.f32 -1.442695, %v1307_v27 }
 0x30d   :  { %4030 = vmatprep.subr.bf16.mxu0 %v4439_v18 }
 0x30e   :  { %v4918_v0 = vpop.f32.mrb[92].mxu0 }
 0x30f   :  { %v2380_v9 = vpop.f32.mrb[93].mxu0  ;;  %4009 = vmatmul.mubr.msk.bf16.vlgmr.msra.gmra.mrb[88].mxu1 %vm456_vm3, %v4620_v25  ;;  %4021 = vmatmul.mubr.msk.bf16.vlgmr.msra.gmra.mrb[96].mxu0 %vm456_vm3, %v4620_v25 }
 0x310   :  { %v4929_v2 = vpop.f32.mrb[94].mxu0  ;;  %4013 = vmatpush3.bf16.msra.mxu1 %v2398_v15  ;;  %4014 = vmatprep.mubr.msk.bf16.mxu1 %vm4440_vm2, %v4439_v18 }
 0x311   :  { %v2402_v4 = vpack.c.bf16 %v4929_v2, %v4918_v0  ;;  %v3946_v5 = vpop.f32.mrb[48].mxu1  ;;  %v2383_v6 = vpop.f32.mrb[95].mxu0  ;;  %4032 = vmatprep.mubr.msk.bf16.mxu0 %vm4440_vm2, %v4439_v18  ;;  %4024 = vmatprep.subr.bf16.mxu1 %v4439_v18 }
 0x312   :  { %v1747_v8 = vadd.f32 %v3946_v5, %v4927_v33  ;;  %v2401_v10 = vpack.c.bf16 %v2383_v6, %v2380_v9  ;;  %v1738_v11 = vpop.f32.mrb[49].mxu1 }
 0x313   :  { %v1739_v14 = vadd.f32 %v4927_v33, %v1738_v11  ;;  %v3947_v15 = vpop.f32.mrb[50].mxu1 }
 0x314   :  { %4174 = vtanh.f32 %v1747_v8  ;;  %v1750_v19 = vadd.f32 %v3947_v15, %v4927_v33  ;;  %v1741_v20 = vpop.f32.mrb[51].mxu1  ;;  %4031 = vmatpush3.bf16.msra.mxu0 %v2401_v10  ;;  %v1344_v8 = vadd.f32 %v4854_v42, %v4889_v58  ;;  %v1347_v42 = vadd.f32 %v4858_v44, %v4889_v58 }
 0x315   :  { %4176 = vtanh.f32 %v1739_v14  ;;  %v1742_v24 = vadd.f32 %v4927_v33, %v1741_v20 }
 0x316   :  { %4178 = vtanh.f32 %v1750_v19  ;;  %v3536_v35 = vmul.f32 -1.442695, %v1347_v42 }
 0x317   :  { %4180 = vtanh.f32 %v1742_v24  ;;  %4015 = vmatmul.mubr.msk.bf16.vlgmr.msra.gmra.mrb[92].mxu1 %vm456_vm3, %v4620_v25  ;;  %4033 = vmatmul.mubr.msk.bf16.vlgmr.msra.gmra.mrb[100].mxu0 %vm456_vm3, %v4620_v25  ;;  %v4167_v25 = vpop.eup %4166 }
 0x318   :  { %4182 = vrcp.f32 %v1500_v16  ;;  %4025 = vmatpush3.bf16.msra.mxu1 %v2400_v28  ;;  %4026 = vmatprep.mubr.msk.bf16.mxu1 %vm4440_vm2, %v4439_v18  ;;  %v4169_v59 = vpop.eup %4168  ;;  %v3529_v28 = vmul.f32 -1.442695, %v1320_v30  ;;  %v1897_v1 = vsub.f32 1.0, %v4167_v25  ;;  %v3534_v30 = vmul.f32 -1.442695, %v1339_v17 }
 0x319   :  { %4184 = vrcp.f32 %v1498_v21  ;;  %4036 = vmatprep.subr.bf16.mxu1 %v4439_v18  ;;  %v4171_v26 = vpop.eup %4170  ;;  %v1900_v5 = vsub.f32 1.0, %v4169_v59  ;;  %v3535_v21 = vmul.f32 -1.442695, %v1344_v8 }
 0x31a   :  { %4186 = vrcp.f32 %v1501_v34  ;;  %v4173_v60 = vpop.eup %4172  ;;  %v1499_v3 = vadd.f32 1.0, %v4171_v26  ;;  %v3533_v34 = vmul.f32 -1.442695, %v1336_v13 }
 0x31b   :  { %4188 = vpow2.f32 %v3527_v29  ;;  %v1898_v10 = vsub.f32 1.0, %v4173_v60 }
 0x31c   :  { %4190 = vpow2.f32 %v3525_v36 }
 0x31d   :  { %4192 = vpow2.f32 %v3528_v38 }
 0x31e   :  { %v4175_v63 = vpop.eup %4174  ;;  %4194 = vpow2.f32 %v3526_v32 }
 0x31f   :  { %v4177_v9 = vpop.eup %4176  ;;  %4196 = vpow2.f32 %v3531_v22  ;;  %4027 = vmatmul.mubr.msk.bf16.vlgmr.msra.gmra.mrb[96].mxu1 %vm456_vm3, %v4438_v41  ;;  %v4972_v6 = vmul.f32 %v4175_v63, %v1899_v62 }
 0x320   :  { %v4179_v7 = vpop.eup %4178  ;;  %4198 = vpow2.f32 %v3529_v28  ;;  %4037 = vmatpush3.bf16.msra.mxu1 %v2402_v4  ;;  %4038 = vmatprep.mubr.msk.bf16.mxu1 %vm4440_vm2, %v4439_v18  ;;  %v4981_v11 = vmul.f32 %v4177_v9, %v1897_v1 }
 0x321   :  { %v4181_v12 = vpop.eup %4180  ;;  %4200 = vpow2.f32 %v3532_v61  ;;  %v3950_v14 = vpop.f32.mrb[52].mxu1  ;;  %v4985_v15 = vmul.f32 %v4179_v7, %v1900_v5  ;;  %v1360_v7 = vadd.f32 %v4862_v46, %v4889_v58 }
 0x322   :  { %v4183_v16 = vpop.eup %4182  ;;  %4202 = vpow2.f32 %v3530_v40  ;;  %v1763_v0 = vadd.f32 %v3950_v14, %v4927_v33  ;;  %v1754_v2 = vpop.f32.mrb[53].mxu1  ;;  %v4990_v18 = vmul.f32 %v4181_v12, %v1898_v10 }
 0x323   :  { %v4185_v4 = vpop.eup %4184  ;;  %4204 = vrcp.f32 %v1499_v3  ;;  %v1755_v43 = vadd.f32 %v4927_v33, %v1754_v2  ;;  %v3951_v19 = vpop.f32.mrb[54].mxu1  ;;  %v1903_v61 = vsub.f32 1.0, %v4183_v16 }
 0x324   :  { %v4187_v20 = vpop.eup %4186  ;;  %4206 = vtanh.f32 %v1763_v0  ;;  %v1766_v23 = vadd.f32 %v3951_v19, %v4927_v33  ;;  %v1757_v24 = vpop.f32.mrb[55].mxu1  ;;  %v1901_v40 = vsub.f32 1.0, %v4185_v4  ;;  %v3539_v19 = vmul.f32 -1.442695, %v1360_v7 }
 0x325   :  { %v4189_v44 = vpop.eup %4188  ;;  %4208 = vtanh.f32 %v1755_v43  ;;  %v1758_v27 = vadd.f32 %v4927_v33, %v1757_v24  ;;  %v1904_v3 = vsub.f32 1.0, %v4187_v20 }
 0x326   :  { %v4191_v29 = vpop.eup %4190  ;;  %4210 = vtanh.f32 %v1766_v23  ;;  %v1504_v37 = vadd.f32 1.0, %v4189_v44  ;;  %v1352_v44 = vadd.f32 %v4889_v58, %v4864_v47  ;;  %v1376_v47 = vadd.f32 %v4870_v50, %v4889_v58 }
 0x327   :  { %v4193_v36 = vpop.eup %4192  ;;  %4212 = vtanh.f32 %v1758_v27  ;;  %4039 = vmatmul.mubr.msk.bf16.vlgmr.msra.gmra.mrb[100].mxu1 %vm456_vm3, %v4438_v41  ;;  %v1502_v31 = vadd.f32 1.0, %v4191_v29  ;;  %v1371_v50 = vadd.f32 %v4889_v58, %v4876_v53 }
 0x328   :  { %v4195_v45 = vpop.eup %4194  ;;  %4214 = vpow2.f32 %v3535_v21  ;;  %v1505_v32 = vadd.f32 1.0, %v4193_v36 }
 0x329   :  { %v4197_v38 = vpop.eup %4196  ;;  %4216 = vpow2.f32 %v3533_v34  ;;  %v1503_v59 = vadd.f32 1.0, %v4195_v45  ;;  %v1355_v45 = vadd.f32 %v4889_v58, %v4868_v49  ;;  %v1379_v49 = vadd.f32 %v4874_v52, %v4889_v58 }
 0x32a   :  { %v4199_v25 = vpop.eup %4198  ;;  %4218 = vpow2.f32 %v3536_v35  ;;  %v1508_v26 = vadd.f32 1.0, %v4197_v38  ;;  %v1363_v35 = vadd.f32 %v4866_v48, %v4889_v58 }
 0x32b   :  { %v4201_v39 = vpop.eup %4200  ;;  %4220 = vpow2.f32 %v3534_v30  ;;  %v1506_v60 = vadd.f32 1.0, %v4199_v25  ;;  %v3537_v25 = vmul.f32 -1.442695, %v1352_v44 }
 0x32c   :  { %v4203_v22 = vpop.eup %4202  ;;  %4222 = vrcp.f32 %v1504_v37  ;;  %v1509_v63 = vadd.f32 1.0, %v4201_v39  ;;  %v3540_v39 = vmul.f32 -1.442695, %v1363_v35 }
 0x32d   :  { %v4205_v28 = vpop.eup %4204  ;;  %4224 = vrcp.f32 %v1502_v31  ;;  %v1507_v9 = vadd.f32 1.0, %v4203_v22  ;;  %v3538_v22 = vmul.f32 -1.442695, %v1355_v45  ;;  %v1387_v45 = vadd.f32 %v4889_v58, %v4884_v57 }
 0x32e   :  { %v4207_v62 = vpop.eup %4206  ;;  %4226 = vrcp.f32 %v1505_v32  ;;  %v1902_v8 = vsub.f32 1.0, %v4205_v28  ;;  %v1368_v32 = vadd.f32 %v4889_v58, %v4872_v51  ;;  %v3543_v28 = vmul.f32 -1.442695, %v1376_v47 }
 0x32f   :  { %v4209_v1 = vpop.eup %4208  ;;  %4228 = vrcp.f32 %v1503_v59  ;;  %v4998_v41 = vmul.f32 %v4207_v62, %v1903_v61 }
 0x330   :  { %v4211_v5 = vpop.eup %4210  ;;  %4230 = vrcp.f32 %v1508_v26  ;;  %v5002_v10 = vmul.f32 %v4209_v1, %v1901_v40  ;;  %v3541_v51 = vmul.f32 -1.442695, %v1368_v32  ;;  %v3542_v1 = vmul.f32 -1.442695, %v1371_v50 }
 0x331   :  { %v4213_v12 = vpop.eup %4212  ;;  %4232 = vrcp.f32 %v1506_v60  ;;  %v3954_v13 = vpop.f32.mrb[56].mxu1  ;;  %v5004_v14 = vmul.f32 %v4211_v5, %v1904_v3  ;;  %v1392_v5 = vadd.f32 %v4878_v54, %v4889_v58  ;;  %v1395_v54 = vadd.f32 %v4882_v56, %v4889_v58 }
 0x332   :  { %v4215_v16 = vpop.eup %4214  ;;  %4234 = vrcp.f32 %v1509_v63  ;;  %v1779_v42 = vadd.f32 %v3954_v13, %v4927_v33  ;;  %v1770_v0 = vpop.f32.mrb[57].mxu1  ;;  %v5007_v2 = vmul.f32 %v4213_v12, %v1902_v8  ;;  %v3544_v63 = vmul.f32 -1.442695, %v1379_v49 }
 0x333   :  { %v4217_v4 = vpop.eup %4216  ;;  %4236 = vrcp.f32 %v1507_v9  ;;  %v1771_v17 = vadd.f32 %v4927_v33, %v1770_v0  ;;  %v3955_v46 = vpop.f32.mrb[58].mxu1  ;;  %v1512_v24 = vadd.f32 1.0, %v4215_v16  ;;  %v1384_v0 = vadd.f32 %v4889_v58, %v4880_v55 }
 0x334   :  { %v4219_v43 = vpop.eup %4218  ;;  %4238 = vtanh.f32 %v1779_v42  ;;  %v1782_v20 = vadd.f32 %v3955_v46, %v4927_v33  ;;  %v1773_v21 = vpop.f32.mrb[59].mxu1  ;;  %v1510_v29 = vadd.f32 1.0, %v4217_v4  ;;  %v3546_v50 = vmul.f32 -1.442695, %v1387_v45 }
 0x335   :  { %v4221_v23 = vpop.eup %4220  ;;  %4240 = vtanh.f32 %v1771_v17  ;;  %v1774_v34 = vadd.f32 %v4927_v33, %v1773_v21  ;;  %v1513_v30 = vadd.f32 1.0, %v4219_v43  ;;  %v3545_v35 = vmul.f32 -1.442695, %v1384_v0 }
 0x336   :  { %v4223_v27 = vpop.eup %4222  ;;  %4242 = vtanh.f32 %v1782_v20  ;;  %v1511_v38 = vadd.f32 1.0, %v4221_v23  ;;  %v3547_v23 = vmul.f32 -1.442695, %v1392_v5 }
 0x337   :  { %v4225_v36 = vpop.eup %4224  ;;  %4244 = vtanh.f32 %v1774_v34  ;;  %v1907_v61 = vsub.f32 1.0, %v4223_v27 }
 0x338   :  { %v4227_v37 = vpop.eup %4226  ;;  %4246 = vpow2.f32 %v3539_v19  ;;  %v1905_v52 = vsub.f32 1.0, %v4225_v36  ;;  %v3548_v36 = vmul.f32 -1.442695, %v1395_v54 }
 0x339   :  { %v4229_v31 = vpop.eup %4228  ;;  %4248 = vrcp.f32 %v1512_v24  ;;  %v1908_v9 = vsub.f32 1.0, %v4227_v37 }
 0x33a   :  { %v5022_v48 = vpop.eup %4230  ;;  %4250 = vrcp.f32 %v1510_v29  ;;  %v1906_v7 = vsub.f32 1.0, %v4229_v31 }
 0x33b   :  { %v5026_v59 = vpop.eup %4232  ;;  %4252 = vrcp.f32 %v1513_v30 }
 0x33c   :  { %v5030_v26 = vpop.eup %4234  ;;  %4254 = vrcp.f32 %v1511_v38 }
 0x33d   :  { %v5032_v60 = vpop.eup %4236  ;;  %4256 = vpow2.f32 %v3537_v25 }
 0x33e   :  { %v4239_v62 = vpop.eup %4238  ;;  %4258 = vpow2.f32 %v3540_v39 }
 0x33f   :  { %v4241_v40 = vpop.eup %4240  ;;  %4260 = vpow2.f32 %v3538_v22  ;;  %v5034_v3 = vmul.f32 %v4239_v62, %v1907_v61  ;;  %v1911_v62 = vsub.f32 1.0, %v5022_v48 }
 0x340   :  { %v4243_v53 = vpop.eup %4242  ;;  %4262 = vpow2.f32 %v3543_v28  ;;  %v5038_v8 = vmul.f32 %v4241_v40, %v1905_v52  ;;  %v1909_v40 = vsub.f32 1.0, %v5026_v59 }
 0x341   :  { %v4245_v12 = vpop.eup %4244  ;;  %4264 = vpow2.f32 %v3541_v51  ;;  %v3958_v13 = vpop.f32.mrb[60].mxu1  ;;  %v5040_v16 = vmul.f32 %v4243_v53, %v1908_v9  ;;  %v1912_v53 = vsub.f32 1.0, %v5030_v26 }
 0x342   :  { %v4247_v42 = vpop.eup %4246  ;;  %4266 = vpow2.f32 %v3544_v63  ;;  %v1795_v4 = vadd.f32 %v3958_v13, %v4927_v33  ;;  %v1786_v17 = vpop.f32.mrb[61].mxu1  ;;  %v5045_v46 = vmul.f32 %v4245_v12, %v1906_v7  ;;  %v1910_v12 = vsub.f32 1.0, %v5032_v60 }
 0x343   :  { %v5047_v43 = vpop.eup %4248  ;;  %4268 = vpow2.f32 %v3542_v1  ;;  %v1787_v19 = vadd.f32 %v4927_v33, %v1786_v17  ;;  %v3959_v20 = vpop.f32.mrb[62].mxu1  ;;  %v1516_v34 = vadd.f32 1.0, %v4247_v42 }
 0x344   :  { %v5052_v21 = vpop.eup %4250  ;;  %4270 = vtanh.f32 %v1795_v4  ;;  %v1798_v55 = vadd.f32 %v3959_v20, %v4927_v33  ;;  %v1789_v24 = vpop.f32.mrb[63].mxu1 }
 0x345   :  { %v5055_v44 = vpop.eup %4252  ;;  %4272 = vtanh.f32 %v1787_v19  ;;  %v1790_v27 = vadd.f32 %v4927_v33, %v1789_v24  ;;  %v1913_v45 = vsub.f32 1.0, %v5052_v21 }
 0x346   :  { %v5058_v29 = vpop.eup %4254  ;;  %4274 = vtanh.f32 %v1798_v55 }
 0x347   :  { %v4257_v56 = vpop.eup %4256  ;;  %4276 = vtanh.f32 %v1790_v27 }
 0x348   :  { %v4259_v30 = vpop.eup %4258  ;;  %4278 = vpow2.f32 %v3547_v23  ;;  %v1514_v58 = vadd.f32 1.0, %v4257_v56  ;;  %v1915_v56 = vsub.f32 1.0, %v5047_v43 }
 0x349   :  { %v4261_v37 = vpop.eup %4260  ;;  %4280 = vrcp.f32 %v1516_v34  ;;  %v3962_v38 = vpop.f32.mrb[64].mxu1  ;;  %v1517_v52 = vadd.f32 1.0, %v4259_v30 }
 0x34a   :  { %v4263_v47 = vpop.eup %4262  ;;  %4282 = vpow2.f32 %v3545_v35  ;;  %v1811_v31 = vadd.f32 %v3962_v38, %v4927_v33  ;;  %v1802_v25 = vpop.f32.mrb[65].mxu1  ;;  %v1515_v9 = vadd.f32 1.0, %v4261_v37 }
 0x34b   :  { %v4265_v32 = vpop.eup %4264  ;;  %4284 = vpow2.f32 %v3548_v36  ;;  %v1803_v39 = vadd.f32 %v4927_v33, %v1802_v25  ;;  %v3963_v49 = vpop.f32.mrb[66].mxu1  ;;  %v1520_v23 = vadd.f32 1.0, %v4263_v47  ;;  %v1916_v47 = vsub.f32 1.0, %v5055_v44 }
 0x34c   :  { %v4267_v22 = vpop.eup %4266  ;;  %4286 = vtanh.f32 %v1811_v31  ;;  %v1814_v28 = vadd.f32 %v3963_v49, %v4927_v33  ;;  %v1805_v51 = vpop.f32.mrb[67].mxu1  ;;  %v1518_v27 = vadd.f32 1.0, %v4265_v32  ;;  %v1914_v32 = vsub.f32 1.0, %v5058_v29 }
 0x34d   :  { %v4269_v57 = vpop.eup %4268  ;;  %4288 = vtanh.f32 %v1803_v39  ;;  %v1806_v61 = vadd.f32 %v4927_v33, %v1805_v51  ;;  %v1521_v30 = vadd.f32 1.0, %v4267_v22 }
 0x34e   :  { %v4271_v63 = vpop.eup %4270  ;;  %4290 = vtanh.f32 %v1814_v28  ;;  %v1519_v38 = vadd.f32 1.0, %v4269_v57 }
 0x34f   :  { %v4273_v1 = vpop.eup %4272  ;;  %4292 = vtanh.f32 %v1806_v61  ;;  %v5069_v5 = vmul.f32 %v4271_v63, %v1911_v62 }
 0x350   :  { %v4275_v7 = vpop.eup %4274  ;;  %4294 = vpow2.f32 %v3546_v50  ;;  %v5072_v13 = vmul.f32 %v4273_v1, %v1909_v40 }
 0x351   :  { %v4277_v42 = vpop.eup %4276  ;;  %4296 = vrcp.f32 %v1514_v58  ;;  %v3966_v48 = vpop.f32.mrb[68].mxu1  ;;  %v5074_v0 = vmul.f32 %v4275_v7, %v1912_v53 }
 0x352   :  { %v4279_v4 = vpop.eup %4278  ;;  %4298 = vrcp.f32 %v1517_v52  ;;  %v1827_v59 = vadd.f32 %v3966_v48, %v4927_v33  ;;  %v1818_v17 = vpop.f32.mrb[69].mxu1  ;;  %v5077_v54 = vmul.f32 %v4277_v42, %v1910_v12 }
 0x353   :  { %v4281_v26 = vpop.eup %4280  ;;  %4300 = vrcp.f32 %v1515_v9  ;;  %v1819_v19 = vadd.f32 %v4927_v33, %v1818_v17  ;;  %v3967_v20 = vpop.f32.mrb[70].mxu1  ;;  %v1524_v61 = vadd.f32 1.0, %v4279_v4  ;;  %v4142_v4 = vld [vmem:[%s5544_s12] sm:$0xff]  }
 0x354   :  { %v4283_v60 = vpop.eup %4282  ;;  %4302 = vtanh.f32 %v1827_v59  ;;  %v1830_v55 = vadd.f32 %v3967_v20, %v4927_v33  ;;  %v1821_v24 = vpop.f32.mrb[71].mxu1  ;;  %v1919_v9 = vsub.f32 1.0, %v4281_v26  ;;  %4042 = vmatprep.subr.bf16.mxu0 %v4142_v4 }
 0x355   :  { %v4285_v34 = vpop.eup %4284  ;;  %4304 = vtanh.f32 %v1819_v19  ;;  %v1822_v35 = vadd.f32 %v4927_v33, %v1821_v24  ;;  %v1522_v40 = vadd.f32 1.0, %v4283_v60  ;;  %4043 = vmatpush3.bf16.msra.mxu0 %v4142_v4 }
 0x356   :  { %v4287_v36 = vpop.eup %4286  ;;  %4306 = vtanh.f32 %v1830_v55  ;;  %v1525_v7 = vadd.f32 1.0, %v4285_v34 }
 0x357   :  { %v4289_v37 = vpop.eup %4288  ;;  %4308 = vtanh.f32 %v1822_v35  ;;  %v5085_v31 = vmul.f32 %v4287_v36, %v1915_v56 }
 0x358   :  { %v4291_v25 = vpop.eup %4290  ;;  %4310 = vrcp.f32 %v1520_v23  ;;  %v5088_v39 = vmul.f32 %v4289_v37, %v1913_v45  ;;  %v4143_v45 = vld [vmem:[%s5544_s12 + $0x8] sm:$0xff]  }
 0x359   :  { %v4293_v49 = vpop.eup %4292  ;;  %4312 = vrcp.f32 %v1518_v27  ;;  %v3970_v43 = vpop.f32.mrb[72].mxu1  ;;  %v5090_v22 = vmul.f32 %v4291_v25, %v1916_v47  ;;  %4044 = vmatprep.subr.bf16.mxu0 %v4143_v45 }
 0x35a   :  { %v4295_v50 = vpop.eup %4294  ;;  %4314 = vrcp.f32 %v1521_v30  ;;  %v1843_v21 = vadd.f32 %v3970_v43, %v4927_v33  ;;  %v1834_v28 = vpop.f32.mrb[73].mxu1  ;;  %v5093_v51 = vmul.f32 %v4293_v49, %v1914_v32  ;;  %4045 = vmatpush3.bf16.msra.mxu0 %v4143_v45 }
 0x35b   :  { %v4297_v44 = vpop.eup %4296  ;;  %4316 = vrcp.f32 %v1519_v38  ;;  %v1835_v57 = vadd.f32 %v4927_v33, %v1834_v28  ;;  %v3971_v58 = vpop.f32.mrb[74].mxu1  ;;  %v1523_v12 = vadd.f32 1.0, %v4295_v50 }
 0x35c   :  { %v4299_v29 = vpop.eup %4298  ;;  %4318 = vtanh.f32 %v1843_v21  ;;  %v1846_v62 = vadd.f32 %v3971_v58, %v4927_v33  ;;  %v1837_v63 = vpop.f32.mrb[75].mxu1  ;;  %v1917_v42 = vsub.f32 1.0, %v4297_v44 }
 0x35d   :  { %v4301_v52 = vpop.eup %4300  ;;  %4320 = vtanh.f32 %v1835_v57  ;;  %v1838_v1 = vadd.f32 %v4927_v33, %v1837_v63  ;;  %v1920_v59 = vsub.f32 1.0, %v4299_v29 }
 0x35e   :  { %v4303_v53 = vpop.eup %4302  ;;  %4322 = vtanh.f32 %v1846_v62  ;;  %v1918_v20 = vsub.f32 1.0, %v4301_v52 }
 0x35f   :  { %v4305_v48 = vpop.eup %4304  ;;  %4324 = vtanh.f32 %v1838_v1  ;;  %v5101_v17 = vmul.f32 %v4303_v53, %v1919_v9 }
 0x360   :  { %v4307_v19 = vpop.eup %4306  ;;  %4326 = vrcp.f32 %v1524_v61  ;;  %v5103_v60 = vmul.f32 %v4305_v48, %v1917_v42 }
 0x361   :  { %v4309_v26 = vpop.eup %4308  ;;  %4328 = vrcp.f32 %v1522_v40  ;;  %v3974_v23 = vpop.f32.mrb[76].mxu1  ;;  %v5105_v55 = vmul.f32 %v4307_v19, %v1920_v59 }
 0x362   :  { %v4311_v24 = vpop.eup %4310  ;;  %4330 = vrcp.f32 %v1525_v7  ;;  %v1859_v34 = vadd.f32 %v3974_v23, %v4927_v33  ;;  %v1850_v27 = vpop.f32.mrb[77].mxu1  ;;  %v5108_v35 = vmul.f32 %v4309_v26, %v1918_v20 }
 0x363   :  { %v4313_v56 = vpop.eup %4312  ;;  %4332 = vrcp.f32 %v1523_v12  ;;  %v1851_v36 = vadd.f32 %v4927_v33, %v1850_v27  ;;  %v3975_v30 = vpop.f32.mrb[78].mxu1  ;;  %v1923_v49 = vsub.f32 1.0, %v4311_v24  ;;  %v4442_v24 = vmov 0   ;;  %v4145_v27 = vld [vmem:[%s5545_s14 + $0x8] sm:$0xff]  }
 0x364   :  { %v4315_v37 = vpop.eup %4314  ;;  %4334 = vtanh.f32 %v1859_v34  ;;  %v1862_v38 = vadd.f32 %v3975_v30, %v4927_v33  ;;  %v1853_v47 = vpop.f32.mrb[79].mxu1  ;;  %v1921_v50 = vsub.f32 1.0, %v4313_v56  ;;  %4101 = vset.pattern.permute.xlu0 %v4442_v24  ;;  %4102 = vset.pattern.permute.xlu1 %v4442_v24  ;;  %v4144_v34 = vld [vmem:[%s5545_s14] sm:$0xff]  }
 0x365   :  { %v4317_v25 = vpop.eup %4316  ;;  %4336 = vtanh.f32 %v1851_v36  ;;  %v1854_v32 = vadd.f32 %v4927_v33, %v1853_v47  ;;  %v1924_v28 = vsub.f32 1.0, %v4315_v37  ;;  %4062 = vmatprep.subr.bf16.mxu1 %v4144_v34  ;;  %v5141_v56 = vld [vmem:[%s5546_s11] ss:$0 sm:$0xff] }
 0x366   :  { %v4319_v43 = vpop.eup %4318  ;;  %4338 = vtanh.f32 %v1862_v38  ;;  %v1922_v58 = vsub.f32 1.0, %v4317_v25  ;;  %4063 = vmatpush3.bf16.msra.mxu1 %v4144_v34 }
 0x367   :  { %v4321_v21 = vpop.eup %4320  ;;  %4340 = vtanh.f32 %v1854_v32  ;;  %v5116_v44 = vmul.f32 %v4319_v43, %v1923_v49  ;;  %4064 = vmatprep.subr.bf16.mxu1 %v4145_v27 }
 0x368   :  { %v4323_v57 = vpop.eup %4322  ;;  %v5118_v29 = vmul.f32 %v4321_v21, %v1921_v50 }
 0x369   :  { %v4325_v61 = vpop.eup %4324  ;;  %v5120_v62 = vmul.f32 %v4323_v57, %v1924_v28 }
 0x36a   :  { %v4327_v63 = vpop.eup %4326  ;;  %v5122_v33 = vmul.f32 %v4325_v61, %v1922_v58  ;;  %4065 = vmatpush3.bf16.msra.mxu1 %v4145_v27 }
 0x36b   :  { %v4329_v52 = vpop.eup %4328  ;;  %v1927_v9 = vsub.f32 1.0, %v4327_v63 }
 0x36c   :  { %v4331_v40 = vpop.eup %4330  ;;  %v1925_v7 = vsub.f32 1.0, %v4329_v52 }
 0x36d   :  { %v4333_v1 = vpop.eup %4332  ;;  %v1928_v42 = vsub.f32 1.0, %v4331_v40 }
 0x36e   :  { %v4335_v53 = vpop.eup %4334  ;;  %v1926_v59 = vsub.f32 1.0, %v4333_v1 }
 0x36f   :  { %v4337_v12 = vpop.eup %4336  ;;  %v5124_v48 = vmul.f32 %v4335_v53, %v1927_v9 }
 0x370   :  { %v4339_v4 = vpop.eup %4338  ;;  %v5126_v19 = vmul.f32 %v4337_v12, %v1925_v7 }
 0x371   :  { %v4341_v20 = vpop.eup %4340  ;;  %v5128_v26 = vmul.f32 %v4339_v4, %v1928_v42 }
 0x372   :  { %v5130_v23 = vmul.f32 %v4341_v20, %v1926_v59 }
 0x3d2   :  { %v2437_v36 = vpop.f32.mrb[80].mxu1 }
 0x3d3   :  { %v3998_v30 = vpop.f32.mrb[81].mxu1  ;;  %v2737_v37 = vadd.f32 %v5141_v56, %v2437_v36 }
 0x3d4   :  { %v2440_v45 = vpop.f32.mrb[82].mxu1 }
 0x3d5   :  { %v2738_v38 = vadd.f32 %v5141_v56, %v2440_v45  ;;  %v3999_v47 = vpop.f32.mrb[83].mxu1 }
 0x3d7   :  { %v2753_v25 = vpack.c.bf16 %v2738_v38, %v2737_v37 }
 0x3d9   :  { %3010 = vrot.lane.b32.xlu0 %v2753_v25, %s4441_s7  ;;  %4046 = vmatprep.mubr.msk.bf16.mxu0 %vm1188_vm5, %v2753_v25 }
 0x3da   :  { %v2478_v32 = vpop.f32.mrb[84].mxu1 }
 0x3db   :  { %v4004_v49 = vpop.f32.mrb[85].mxu1  ;;  %v2739_v50 = vadd.f32 %v5141_v56, %v2478_v32 }
 0x3dc   :  { %v2481_v43 = vpop.f32.mrb[86].mxu1 }
 0x3dd   :  { %v2740_v21 = vadd.f32 %v5141_v56, %v2481_v43  ;;  %v4005_v28 = vpop.f32.mrb[87].mxu1 }
 0x3de   :  { %v2213_v28 = vld [vmem:[%s5547_s16] sm:$0xff] }
 0x3df   :  { %v2754_v57 = vpack.c.bf16 %v2740_v21, %v2739_v50 }
 0x3e1   :  { %3012 = vrot.lane.b32.xlu1 %v2754_v57, %s4441_s7  ;;  %4047 = vmatmul.mubr.msk.bf16.vlgmr.msra.gmra.mrb[104].mxu0 %vm1188_vm5, %v2754_v57 }
 0x3e2   :  { %v2519_v58 = vpop.f32.mrb[88].mxu1  ;;  %v2601_v61 = vpop.f32.mrb[96].mxu0 }
 0x3e3   :  { %v4010_v63 = vpop.f32.mrb[89].mxu1  ;;  %v2745_v52 = vadd.f32 %v5141_v56, %v2601_v61  ;;  %v4022_v40 = vpop.f32.mrb[97].mxu0  ;;  %v2741_v53 = vadd.f32 %v5141_v56, %v2519_v58 }
 0x3e4   :  { %v2522_v1 = vpop.f32.mrb[90].mxu1  ;;  %v2604_v9 = vpop.f32.mrb[98].mxu0  ;;  %v2216_v40 = vld [vmem:[%s5547_s16 + $0x18] sm:$0xff] }
 0x3e5   :  { %v2742_v7 = vadd.f32 %v5141_v56, %v2522_v1  ;;  %v2746_v12 = vadd.f32 %v5141_v56, %v2604_v9  ;;  %v4011_v42 = vpop.f32.mrb[91].mxu1  ;;  %v4023_v4 = vpop.f32.mrb[99].mxu0 }
 0x3e7   :  { %v2755_v59 = vpack.c.bf16 %v2742_v7, %v2741_v53  ;;  %v2757_v20 = vpack.c.bf16 %v2746_v12, %v2745_v52  ;;  %v2222_v53 = vld [vmem:[%s5547_s16 + $0x48] sm:$0xff] }
 0x3e9   :  { %3014 = vrot.lane.b32.xlu0 %v2755_v59, %s4441_s7  ;;  %4050 = vmatprep.mubr.msk.bf16.mxu0 %vm1188_vm5, %v2755_v59 }
 0x3ea   :  { %v2560_v24 = vpop.f32.mrb[92].mxu1  ;;  %v2683_v34 = vpop.f32.mrb[100].mxu0 }
 0x3eb   :  { %v2749_v27 = vadd.f32 %v5141_v56, %v2683_v34  ;;  %v4016_v36 = vpop.f32.mrb[93].mxu1  ;;  %v4034_v30 = vpop.f32.mrb[101].mxu0  ;;  %v2743_v38 = vadd.f32 %v5141_v56, %v2560_v24  ;;  %v2214_v34 = vld [vmem:[%s5547_s16 + $0x8] sm:$0xff] }
 0x3ec   :  { %v2563_v45 = vpop.f32.mrb[94].mxu1  ;;  %v2686_v37 = vpop.f32.mrb[102].mxu0  ;;  %v2226_v36 = vld [vmem:[%s5547_s16 + $0x68] sm:$0xff]  ;;  %v2221_v30 = vld [vmem:[%s5547_s16 + $0x40] sm:$0xff] }
 0x3ed   :  { %v2744_v47 = vadd.f32 %v5141_v56, %v2563_v45  ;;  %v2750_v25 = vadd.f32 %v5141_v56, %v2686_v37  ;;  %3018 = vrot.lane.b32.xlu0 %v2757_v20, %s4441_s7  ;;  %v4017_v32 = vpop.f32.mrb[95].mxu1  ;;  %v4035_v49 = vpop.f32.mrb[103].mxu0  ;;  %v2220_v45 = vld [vmem:[%s5547_s16 + $0x38] sm:$0xff]  ;;  %v2223_v37 = vld [vmem:[%s5547_s16 + $0x50] sm:$0xff] }
 0x3ee   :  { %v2225_v32 = vld [vmem:[%s5547_s16 + $0x60] sm:$0xff]  ;;  %v112_v49 = vld [vmem:[%s5548_s9 + $0x18] sm:$0xff] }
 0x3ef   :  { %v2756_v43 = vpack.c.bf16 %v2744_v47, %v2743_v38  ;;  %v2759_v50 = vpack.c.bf16 %v2750_v25, %v2749_v27  ;;  %v2218_v27 = vld [vmem:[%s5547_s16 + $0x28] sm:$0xff]  ;;  %v2228_v38 = vld [vmem:[%s5547_s16 + $0x78] sm:$0xff]  ;;  %v2217_v47 = vld [vmem:[%s5547_s16 + $0x20] sm:$0xff] }
 0x3f0   :  { %v110_v25 = vld [vmem:[%s5548_s9 + $0x8] sm:$0xff] }
 0x3f1   :  { %3016 = vrot.lane.b32.xlu1 %v2756_v43, %s4441_s7  ;;  %3022 = vrot.lane.b32.xlu0 %v2759_v50, %s4441_s7 }
 0x3f2   :  { %v2642_v21 = vpop.f32.mrb[96].mxu1  ;;  %4051 = vmatmul.mubr.msk.bf16.gmra.mrb[108].mxu0 %vm1188_vm5, %v2756_v43  ;;  %v2219_v43 = vld [vmem:[%s5547_s16 + $0x30] sm:$0xff] }
 0x3f3   :  { %v4028_v57 = vpop.f32.mrb[97].mxu1  ;;  %4054 = vmatprep.mubr.msk.bf16.mxu0 %vm1188_vm5, %v2757_v20  ;;  %v2747_v61 = vadd.f32 %v5141_v56, %v2642_v21  ;;  %v2224_v20 = vld [vmem:[%s5547_s16 + $0x58] sm:$0xff]  ;;  %v2227_v21 = vld [vmem:[%s5547_s16 + $0x70] sm:$0xff] }
 0x3f4   :  { %v2645_v58 = vpop.f32.mrb[98].mxu1  ;;  %v109_v57 = vld [vmem:[%s5548_s9] sm:$0xff] }
 0x3f5   :  { %v2748_v63 = vadd.f32 %v5141_v56, %v2645_v58  ;;  %3209 = vperm.xlu0 %4101, %v2213_v28   ;;  %v4029_v52 = vpop.f32.mrb[99].mxu1  ;;  %v128_v28 = vld [vmem:[%s5548_s9 + $0x98] sm:$0xff]  ;;  %v114_v58 = vld [vmem:[%s5548_s9 + $0x28] sm:$0xff] }
 0x3f6   :  { %v125_v52 = vld [vmem:[%s5548_s9 + $0x80] sm:$0xff] }
 0x3f7   :  { %v2758_v1 = vpack.c.bf16 %v2748_v63, %v2747_v61  ;;  %v111_v61 = vld [vmem:[%s5548_s9 + $0x10] sm:$0xff]  ;;  %v130_v63 = vld [vmem:[%s5548_s9 + $0xa8] sm:$0xff] }
 0x3f9   :  { %3020 = vrot.lane.b32.xlu1 %v2758_v1, %s4441_s7  ;;  %3224 = vperm.xlu0 %4101, %v2216_v40   ;;  %v116_v40 = vld [vmem:[%s5548_s9 + $0x38] sm:$0xff] }
 0x3fa   :  { %v2724_v9 = vpop.f32.mrb[100].mxu1  ;;  %4055 = vmatmul.mubr.msk.bf16.gmra.mrb[112].mxu0 %vm1188_vm5, %v2758_v1  ;;  %v127_v1 = vld [vmem:[%s5548_s9 + $0x90] sm:$0xff] }
 0x3fb   :  { %v4040_v7 = vpop.f32.mrb[101].mxu1  ;;  %4058 = vmatprep.mubr.msk.bf16.mxu0 %vm1188_vm5, %v2759_v50  ;;  %v2751_v42 = vadd.f32 %v5141_v56, %v2724_v9  ;;  %v126_v50 = vld [vmem:[%s5548_s9 + $0x88] sm:$0xff]  ;;  %v132_v9 = vld [vmem:[%s5548_s9 + $0xb8] sm:$0xff] }
 0x3fc   :  { %v2727_v12 = vpop.f32.mrb[102].mxu1  ;;  %v118_v7 = vld [vmem:[%s5548_s9 + $0x48] sm:$0xff] }
 0x3fd   :  { %v2752_v4 = vadd.f32 %v5141_v56, %v2727_v12  ;;  %3254 = vperm.xlu0 %4101, %v2222_v53   ;;  %v4041_v59 = vpop.f32.mrb[103].mxu1  ;;  %v2215_v56 = vld [vmem:[%s5547_s16 + $0x10] sm:$0xff]  ;;  %v113_v53 = vld [vmem:[%s5548_s9 + $0x20] sm:$0xff] }
 0x3fe   :  { %v129_v12 = vld [vmem:[%s5548_s9 + $0xa0] sm:$0xff]  ;;  %v120_v59 = vld [vmem:[%s5548_s9 + $0x58] sm:$0xff] }
 0x3ff   :  { %v2760_v24 = vpack.c.bf16 %v2752_v4, %v2751_v42  ;;  %v134_v42 = vld [vmem:[%s5548_s9 + $0xc8] sm:$0xff]  ;;  %v115_v4 = vld [vmem:[%s5548_s9 + $0x30] sm:$0xff] }
 0x401   :  { %3024 = vrot.lane.b32.xlu1 %v2760_v24, %s4441_s7  ;;  %3264 = vperm.xlu0 %4101, %v2224_v20   ;;  %v131_v20 = vld [vmem:[%s5548_s9 + $0xb0] sm:$0xff] }
 0x402   :  { %4059 = vmatmul.mubr.msk.bf16.gmra.mrb[116].mxu0 %vm1188_vm5, %v2760_v24  ;;  %v136_v24 = vld [vmem:[%s5548_s9 + $0xd8] sm:$0xff] }
 0x405   :  { %3214 = vperm.xlu1 %4102, %v2214_v34   ;;  %3234 = vperm.xlu0 %4101, %v2218_v27   ;;  %v117_v34 = vld [vmem:[%s5548_s9 + $0x40] sm:$0xff]  ;;  %v122_v27 = vld [vmem:[%s5548_s9 + $0x68] sm:$0xff] }
 0x409   :  { %3219 = vperm.xlu1 %4102, %v2215_v56   ;;  %3274 = vperm.xlu0 %4101, %v2226_v36   ;;  %v133_v56 = vld [vmem:[%s5548_s9 + $0xc0] sm:$0xff]  ;;  %v138_v36 = vld [vmem:[%s5548_s9 + $0xe8] sm:$0xff] }
 0x40d   :  { %3249 = vperm.xlu1 %4102, %v2221_v30   ;;  %3244 = vperm.xlu0 %4101, %v2220_v45   ;;  %v119_v30 = vld [vmem:[%s5548_s9 + $0x50] sm:$0xff]  ;;  %v124_v45 = vld [vmem:[%s5548_s9 + $0x78] sm:$0xff] }
 0x411   :  { %3259 = vperm.xlu1 %4102, %v2223_v37   ;;  %3284 = vperm.xlu0 %4101, %v2228_v38   ;;  %v135_v38 = vld [vmem:[%s5548_s9 + $0xd0] sm:$0xff] }
 0x415   :  { %3229 = vperm.xlu1 %4102, %v2217_v47   ;;  %1968 = vperm.xlu0 %4101, %v110_v25   ;;  %v140_v47 = vld [vmem:[%s5548_s9 + $0xf8] sm:$0xff]  ;;  %v121_v25 = vld [vmem:[%s5548_s9 + $0x60] sm:$0xff] }
 0x419   :  { %3269 = vperm.xlu1 %4102, %v2225_v32   ;;  %1978 = vperm.xlu0 %4101, %v112_v49   ;;  %v137_v49 = vld [vmem:[%s5548_s9 + $0xe0] sm:$0xff] }
 0x41d   :  { %3239 = vperm.xlu1 %4102, %v2219_v43   ;;  %2048 = vperm.xlu0 %4101, %v126_v50   ;;  %v123_v43 = vld [vmem:[%s5548_s9 + $0x70] sm:$0xff] }
 0x421   :  { %3279 = vperm.xlu1 %4102, %v2227_v21   ;;  %2058 = vperm.xlu0 %4101, %v128_v28   ;;  %v139_v21 = vld [vmem:[%s5548_s9 + $0xf0] sm:$0xff] }
 0x425   :  { %1963 = vperm.xlu1 %4102, %v109_v57   ;;  %1988 = vperm.xlu0 %4101, %v114_v58  }
 0x429   :  { %1973 = vperm.xlu1 %4102, %v111_v61   ;;  %2068 = vperm.xlu0 %4101, %v130_v63  }
 0x42d   :  { %2043 = vperm.xlu1 %4102, %v125_v52   ;;  %1998 = vperm.xlu0 %4101, %v116_v40  }
 0x431   :  { %2053 = vperm.xlu1 %4102, %v127_v1   ;;  %2078 = vperm.xlu0 %4101, %v132_v9  }
 0x435   :  { %1983 = vperm.xlu1 %4102, %v113_v53   ;;  %2008 = vperm.xlu0 %4101, %v118_v7  }
 0x439   :  { %2063 = vperm.xlu1 %4102, %v129_v12   ;;  %2088 = vperm.xlu0 %4101, %v134_v42  }
 0x43d   :  { %1993 = vperm.xlu1 %4102, %v115_v4   ;;  %2018 = vperm.xlu0 %4101, %v120_v59  }
 0x441   :  { %2073 = vperm.xlu1 %4102, %v131_v20   ;;  %2098 = vperm.xlu0 %4101, %v136_v24  }
 0x445   :  { %2003 = vperm.xlu1 %4102, %v117_v34   ;;  %2028 = vperm.xlu0 %4101, %v122_v27  }
 0x449   :  { %2083 = vperm.xlu1 %4102, %v133_v56   ;;  %2108 = vperm.xlu0 %4101, %v138_v36  }
 0x44b   :  { %v3011_v37 = vpop.permute.xlu0 %3010 }
 0x44c   :  { %4066 = vmatprep.mubr.msk.bf16.mxu1 %vm1188_vm5, %v3011_v37 }
 0x44d   :  { %2013 = vperm.xlu1 %4102, %v119_v30   ;;  %2038 = vperm.xlu0 %4101, %v124_v45  }
 0x451   :  { %2093 = vperm.xlu1 %4102, %v135_v38   ;;  %2118 = vperm.xlu0 %4101, %v140_v47  }
 0x453   :  { %v3013_v32 = vpop.permute.xlu1 %3012 }
 0x454   :  { %4067 = vmatmul.mubr.msk.bf16.vlgmr.msra.gmra.mrb[104].mxu1 %vm1188_vm5, %v3013_v32 }
 0x455   :  { %2023 = vperm.xlu1 %4102, %v121_v25  }
 0x459   :  { %2103 = vperm.xlu1 %4102, %v137_v49  }
 0x45b   :  { %v3015_v50 = vpop.permute.xlu0 %3014 }
 0x45c   :  { %4070 = vmatprep.mubr.msk.bf16.mxu1 %vm1188_vm5, %v3015_v50 }
 0x45d   :  { %2033 = vperm.xlu1 %4102, %v123_v43  }
 0x45f   :  { %v3019_v28 = vpop.permute.xlu0 %3018 }
 0x461   :  { %2113 = vperm.xlu1 %4102, %v139_v21  }
 0x463   :  { %v3017_v57 = vpop.permute.xlu1 %3016  ;;  %v3023_v58 = vpop.permute.xlu0 %3022 }
 0x464   :  { %4071 = vmatmul.mubr.msk.bf16.gmra.mrb[108].mxu1 %vm1188_vm5, %v3017_v57 }
 0x465   :  { %4074 = vmatprep.mubr.msk.bf16.mxu1 %vm1188_vm5, %v3019_v28 }
 0x46b   :  { %v3021_v61 = vpop.permute.xlu1 %3020 }
 0x46c   :  { %4075 = vmatmul.mubr.msk.bf16.gmra.mrb[112].mxu1 %vm1188_vm5, %v3021_v61 }
 0x46d   :  { %4078 = vmatprep.mubr.msk.bf16.mxu1 %vm1188_vm5, %v3023_v58 }
 0x473   :  { %v3025_v63 = vpop.permute.xlu1 %3024 }
 0x474   :  { %4079 = vmatmul.mubr.msk.bf16.gmra.mrb[116].mxu1 %vm1188_vm5, %v3025_v63  ;;  %v5327_v52 = vpop.permute.xlu0 %3209 }
 0x478   :  { %v5329_v40 = vpop.permute.xlu0 %3224 }
 0x47c   :  { %v5331_v1 = vpop.permute.xlu0 %3254 }
 0x480   :  { %v5333_v9 = vpop.permute.xlu0 %3264 }
 0x484   :  { %v5335_v53 = vpop.permute.xlu1 %3214  ;;  %v5337_v7 = vpop.permute.xlu0 %3234 }
 0x488   :  { %v5339_v12 = vpop.permute.xlu1 %3219  ;;  %v5341_v42 = vpop.permute.xlu0 %3274 }
 0x48c   :  { %v5343_v4 = vpop.permute.xlu1 %3249  ;;  %v5345_v59 = vpop.permute.xlu0 %3244 }
 0x490   :  { %v5347_v20 = vpop.permute.xlu1 %3259  ;;  %v5349_v24 = vpop.permute.xlu0 %3284 }
 0x494   :  { %v5351_v34 = vpop.permute.xlu1 %3229  ;;  %v1969_v27 = vpop.permute.xlu0 %1968 }
 0x495   :  { %v2122_v30 = vmul.f32 %v1969_v27, %v4990_v18 }
 0x498   :  { %v5353_v56 = vpop.permute.xlu1 %3269  ;;  %v1979_v36 = vpop.permute.xlu0 %1978 }
 0x499   :  { %v2124_v45 = vmul.f32 %v1979_v36, %v4985_v15 }
 0x49b   :  { %v2156_v37 = vadd.f32 %v2124_v45, %v2122_v30 }
 0x49c   :  { %v5357_v38 = vpop.permute.xlu1 %3239  ;;  %v2049_v47 = vpop.permute.xlu0 %2048 }
 0x49d   :  { %v2138_v49 = vmul.f32 %v2049_v47, %v5093_v51 }
 0x4a0   :  { %v5359_v25 = vpop.permute.xlu1 %3279  ;;  %v2059_v32 = vpop.permute.xlu0 %2058 }
 0x4a1   :  { %v2140_v43 = vmul.f32 %v2059_v32, %v5090_v22 }
 0x4a3   :  { %v2172_v50 = vadd.f32 %v2140_v43, %v2138_v49 }
 0x4a4   :  { %v1964_v21 = vpop.permute.xlu1 %1963  ;;  %v1989_v28 = vpop.permute.xlu0 %1988 }
 0x4a5   :  { %v2126_v57 = vmul.f32 %v1989_v28, %v5007_v2  ;;  %v2121_v15 = vmul.f32 %v1964_v21, %v4981_v11 }
 0x4a7   :  { %v2158_v58 = vadd.f32 %v2156_v37, %v2126_v57 }
 0x4a8   :  { %v1974_v18 = vpop.permute.xlu1 %1973  ;;  %v2069_v61 = vpop.permute.xlu0 %2068 }
 0x4a9   :  { %v2123_v63 = vmul.f32 %v1974_v18, %v4972_v6  ;;  %v2142_v27 = vmul.f32 %v2069_v61, %v5108_v35 }
 0x4ab   :  { %v2155_v36 = vadd.f32 %v2123_v63, %v2121_v15  ;;  %v2174_v30 = vadd.f32 %v2172_v50, %v2142_v27 }
 0x4ac   :  { %v2044_v45 = vpop.permute.xlu1 %2043  ;;  %v1999_v51 = vpop.permute.xlu0 %1998 }
 0x4ad   :  { %v2128_v22 = vmul.f32 %v1999_v51, %v5004_v14  ;;  %v2137_v2 = vmul.f32 %v2044_v45, %v5088_v39 }
 0x4af   :  { %v2160_v47 = vadd.f32 %v2158_v58, %v2128_v22 }
 0x4b0   :  { %v2054_v32 = vpop.permute.xlu1 %2053  ;;  %v2079_v49 = vpop.permute.xlu0 %2078 }
 0x4b1   :  { %v2139_v37 = vmul.f32 %v2054_v32, %v5085_v31  ;;  %v2144_v43 = vmul.f32 %v2079_v49, %v5105_v55 }
 0x4b3   :  { %v2171_v11 = vadd.f32 %v2139_v37, %v2137_v2  ;;  %v2176_v21 = vadd.f32 %v2174_v30, %v2144_v43 }
 0x4b4   :  { %v1984_v6 = vpop.permute.xlu1 %1983  ;;  %v2009_v28 = vpop.permute.xlu0 %2008 }
 0x4b5   :  { %v2125_v35 = vmul.f32 %v1984_v6, %v5002_v10  ;;  %v2130_v50 = vmul.f32 %v2009_v28, %v5045_v46  ;;  %v5373_v57 = vpop.f32.mrb[104].mxu0 }
 0x4b6   :  { %v5375_v14 = vpop.f32.mrb[105].mxu0 }
 0x4b7   :  { %v2157_v58 = vadd.f32 %v2155_v36, %v2125_v35  ;;  %v2162_v18 = vadd.f32 %v2160_v47, %v2130_v50  ;;  %v5377_v61 = vpop.f32.mrb[106].mxu0 }
 0x4b8   :  { %v2064_v39 = vpop.permute.xlu1 %2063  ;;  %v2089_v31 = vpop.permute.xlu0 %2088 }
 0x4b9   :  { %v2141_v55 = vmul.f32 %v2064_v39, %v5103_v60  ;;  %v2146_v15 = vmul.f32 %v2089_v31, %v5122_v33  ;;  %v5381_v63 = vpop.f32.mrb[107].mxu0 }
 0x4bb   :  { %v2173_v27 = vadd.f32 %v2171_v11, %v2141_v55  ;;  %v2178_v10 = vadd.f32 %v2176_v21, %v2146_v15 }
 0x4bc   :  { %v1994_v30 = vpop.permute.xlu1 %1993  ;;  %v2019_v46 = vpop.permute.xlu0 %2018 }
 0x4bd   :  { %v2127_v45 = vmul.f32 %v1994_v30, %v4998_v41  ;;  %v2132_v51 = vmul.f32 %v2019_v46, %v5040_v16 }
 0x4bf   :  { %v2159_v36 = vadd.f32 %v2157_v58, %v2127_v45  ;;  %v2164_v22 = vadd.f32 %v2162_v18, %v2132_v51 }
 0x4c0   :  { %v2074_v47 = vpop.permute.xlu1 %2073  ;;  %v2099_v32 = vpop.permute.xlu0 %2098 }
 0x4c1   :  { %v2143_v49 = vmul.f32 %v2074_v47, %v5101_v17  ;;  %v2148_v60 = vmul.f32 %v2099_v32, %v5120_v62 }
 0x4c3   :  { %v2175_v2 = vadd.f32 %v2173_v27, %v2143_v49  ;;  %v2180_v33 = vadd.f32 %v2178_v10, %v2148_v60 }
 0x4c4   :  { %v2004_v37 = vpop.permute.xlu1 %2003  ;;  %v2029_v43 = vpop.permute.xlu0 %2028 }
 0x4c5   :  { %v2129_v11 = vmul.f32 %v2004_v37, %v5038_v8  ;;  %v2134_v21 = vmul.f32 %v2029_v43, %v5077_v54  ;;  %v4052_v6 = vpop.f32.mrb[108].mxu0 }
 0x4c6   :  { %v2853_v41 = vpop.f32.mrb[109].mxu0 }
 0x4c7   :  { %v2161_v28 = vadd.f32 %v2159_v36, %v2129_v11  ;;  %v2166_v16 = vadd.f32 %v2164_v22, %v2134_v21  ;;  %v4053_v35 = vpop.f32.mrb[110].mxu0 }
 0x4c8   :  { %v2084_v50 = vpop.permute.xlu1 %2083  ;;  %v2109_v58 = vpop.permute.xlu0 %2108 }
 0x4c9   :  { %v2145_v18 = vmul.f32 %v2084_v50, %v5118_v29  ;;  %v2150_v17 = vmul.f32 %v2109_v58, %v5130_v23  ;;  %v2856_v62 = vpop.f32.mrb[111].mxu0  ;;  %v5422_v58 = vld [vmem:[%s5549_s13] ss:$0 sm:$0xff] }
 0x4cb   :  { %v2177_v39 = vadd.f32 %v2175_v2, %v2145_v18  ;;  %v2182_v31 = vadd.f32 %v2180_v33, %v2150_v17  ;;  %v2846_v18 = vadd.f32 %v5373_v57, %v5422_v58  ;;  %v2841_v17 = vadd.f32 %v5422_v58, %v5381_v63 }
 0x4cc   :  { %v2014_v55 = vpop.permute.xlu1 %2013  ;;  %v2039_v15 = vpop.permute.xlu0 %2038  ;;  %v2854_v57 = vadd.f32 %v5422_v58, %v2853_v41 }
 0x4cd   :  { %v2131_v8 = vmul.f32 %v2014_v55, %v5034_v3  ;;  %v2136_v54 = vmul.f32 %v2039_v15, %v5074_v0  ;;  %v4056_v27 = vpop.f32.mrb[112].mxu0  ;;  %v3605_v55 = vmul.f32 -1.442695, %v2841_v17  ;;  %v2862_v15 = vadd.f32 %v4052_v6, %v5422_v58 }
 0x4ce   :  { %v2869_v10 = vpop.f32.mrb[113].mxu0 }
 0x4cf   :  { %v2163_v30 = vadd.f32 %v2161_v28, %v2131_v8  ;;  %v5393_v46 = vadd.f32 %v2166_v16, %v2136_v54  ;;  %v5395_v45 = vpop.f32.mrb[114].mxu0  ;;  %v2857_v8 = vadd.f32 %v5422_v58, %v2856_v62  ;;  %v2870_v6 = vadd.f32 %v5422_v58, %v2869_v10 }
 0x4d0   :  { %v2094_v51 = vpop.permute.xlu1 %2093  ;;  %v2119_v29 = vpop.permute.xlu0 %2118 }
 0x4d1   :  { %v2147_v23 = vmul.f32 %v2094_v51, %v5116_v44  ;;  %v2152_v36 = vmul.f32 %v2119_v29, %v5128_v26  ;;  %v5399_v22 = vpop.f32.mrb[115].mxu0 }
 0x4d2   :  { %v2873_v10 = vadd.f32 %v5422_v58, %v5399_v22 }
 0x4d3   :  { %v2179_v47 = vadd.f32 %v2177_v39, %v2147_v23  ;;  %v5401_v32 = vadd.f32 %v2182_v31, %v2152_v36  ;;  %v3609_v23 = vmul.f32 -1.442695, %v2857_v8 }
 0x4d4   :  { %v2024_v3 = vpop.permute.xlu1 %2023 }
 0x4d5   :  { %v2133_v0 = vmul.f32 %v2024_v3, %v5072_v13  ;;  %v5404_v49 = vpop.f32.mrb[116].mxu0  ;;  %v2878_v3 = vadd.f32 %v4056_v27, %v5422_v58  ;;  %v2881_v27 = vadd.f32 %v5395_v45, %v5422_v58 }
 0x4d6   :  { %v5406_v60 = vpop.f32.mrb[117].mxu0 }
 0x4d7   :  { %v2165_v2 = vadd.f32 %v2163_v30, %v2133_v0  ;;  %v5408_v33 = vpop.f32.mrb[118].mxu0  ;;  %v3608_v30 = vmul.f32 -1.442695, %v2854_v57  ;;  %v3614_v62 = vmul.f32 -1.442695, %v2878_v3 }
 0x4d8   :  { %v2104_v37 = vpop.permute.xlu1 %2103  ;;  %v5410_v43 = vpop.f32.mrb[119].mxu0  ;;  %v3615_v17 = vmul.f32 -1.442695, %v2881_v27 }
 0x4d9   :  { %v2149_v44 = vmul.f32 %v2104_v37, %v5126_v19  ;;  %v2838_v19 = vadd.f32 %v5422_v58, %v5375_v14  ;;  %v2865_v14 = vadd.f32 %v4053_v35, %v5422_v58  ;;  %v5441_v37 = vld [vmem:[%s5550_s15] ss:$0 sm:$0xff] }
 0x4db   :  { %v2181_v26 = vadd.f32 %v2179_v47, %v2149_v44  ;;  %v3604_v39 = vmul.f32 -1.442695, %v2838_v19  ;;  %v3611_v51 = vmul.f32 -1.442695, %v2865_v14  ;;  %v2886_v14 = vadd.f32 %v5422_v58, %v5406_v60 }
 0x4dc   :  { %v2034_v11 = vpop.permute.xlu1 %2033 }
 0x4dd   :  { %v2135_v21 = vmul.f32 %v2034_v11, %v5069_v5  ;;  %v2849_v5 = vadd.f32 %v5377_v61, %v5422_v58  ;;  %v3610_v61 = vmul.f32 -1.442695, %v2862_v15 }
 0x4df   :  { %v5414_v28 = vadd.f32 %v2165_v2, %v2135_v21  ;;  %v3607_v31 = vmul.f32 -1.442695, %v2849_v5  ;;  %v3612_v2 = vmul.f32 -1.442695, %v2870_v6 }
 0x4e0   :  { %v2114_v16 = vpop.permute.xlu1 %2113 }
 0x4e1   :  { %v2151_v13 = vmul.f32 %v2114_v16, %v5124_v48  ;;  %v3606_v48 = vmul.f32 -1.442695, %v2846_v18 }
 0x4e3   :  { %v5417_v50 = vadd.f32 %v2181_v26, %v2151_v13  ;;  %4342 = vpow2.f32 %v3606_v48 }
 0x4e4   :  { %4344 = vpow2.f32 %v3604_v39  ;;  %v3613_v39 = vmul.f32 -1.442695, %v2873_v10 }
 0x4e5   :  { %4346 = vpow2.f32 %v3607_v31 }
 0x4e6   :  { %4348 = vpow2.f32 %v3605_v55  ;;  %v2894_v55 = vadd.f32 %v5404_v49, %v5422_v58 }
 0x4e7   :  { %4350 = vpow2.f32 %v3610_v61 }
 0x4e8   :  { %4352 = vpow2.f32 %v3608_v30  ;;  %v3618_v49 = vmul.f32 -1.442695, %v2894_v55 }
 0x4e9   :  { %4354 = vpow2.f32 %v3611_v51  ;;  %v2889_v51 = vadd.f32 %v5422_v58, %v5410_v43 }
 0x4ea   :  { %4356 = vpow2.f32 %v3609_v23 }
 0x4ed   :  { %v4343_v54 = vpop.eup %4342 }
 0x4ee   :  { %v4345_v63 = vpop.eup %4344  ;;  %v2950_v47 = vadd.f32 1.0, %v4343_v54  ;;  %v2897_v54 = vadd.f32 %v5408_v33, %v5422_v58  ;;  %v3617_v33 = vmul.f32 -1.442695, %v2889_v51 }
 0x4ef   :  { %v4347_v29 = vpop.eup %4346  ;;  %v2948_v0 = vadd.f32 1.0, %v4345_v63 }
 0x4f0   :  { %v4349_v36 = vpop.eup %4348  ;;  %v2951_v41 = vadd.f32 1.0, %v4347_v29  ;;  %4358 = vrcp.f32 %v2950_v47  ;;  %v3619_v3 = vmul.f32 -1.442695, %v2897_v54 }
 0x4f1   :  { %v2949_v35 = vadd.f32 1.0, %v4349_v36  ;;  %4360 = vrcp.f32 %v2948_v0  ;;  %v4351_v13 = vpop.eup %4350  ;;  %v3616_v36 = vmul.f32 -1.442695, %v2886_v14 }
 0x4f2   :  { %4362 = vrcp.f32 %v2951_v41  ;;  %v4353_v5 = vpop.eup %4352  ;;  %v2954_v31 = vadd.f32 1.0, %v4351_v13 }
 0x4f3   :  { %4364 = vrcp.f32 %v2949_v35  ;;  %v4355_v48 = vpop.eup %4354  ;;  %v2952_v57 = vadd.f32 1.0, %v4353_v5 }
 0x4f4   :  { %4366 = vpow2.f32 %v3614_v62  ;;  %v4357_v22 = vpop.eup %4356  ;;  %v2955_v61 = vadd.f32 1.0, %v4355_v48 }
 0x4f5   :  { %4368 = vpow2.f32 %v3612_v2  ;;  %v2953_v63 = vadd.f32 1.0, %v4357_v22 }
 0x4fa   :  { %v4359_v15 = vpop.eup %4358 }
 0x4fb   :  { %v4361_v8 = vpop.eup %4360  ;;  %v3177_v60 = vsub.f32 1.0, %v4359_v15 }
 0x4fc   :  { %v4363_v30 = vpop.eup %4362  ;;  %v3175_v6 = vsub.f32 1.0, %v4361_v8 }
 0x4fd   :  { %v4365_v29 = vpop.eup %4364  ;;  %v3178_v35 = vsub.f32 1.0, %v4363_v30 }
 0x4fe   :  { %v4367_v23 = vpop.eup %4366  ;;  %v3176_v58 = vsub.f32 1.0, %v4365_v29 }
 0x4ff   :  { %v4369_v47 = vpop.eup %4368  ;;  %v2958_v62 = vadd.f32 1.0, %v4367_v23 }
 0x500   :  { %v2956_v5 = vadd.f32 1.0, %v4369_v47 }
 0x527   :  { %v4068_v44 = vpop.f32.mrb[104].mxu1 }
 0x528   :  { %v3105_v26 = vadd.f32 %v4068_v44, %v5441_v37  ;;  %v3096_v11 = vpop.f32.mrb[105].mxu1 }
 0x529   :  { %v3097_v21 = vadd.f32 %v5441_v37, %v3096_v11  ;;  %v4069_v16 = vpop.f32.mrb[106].mxu1 }
 0x52a   :  { %4370 = vtanh.f32 %v3105_v26  ;;  %v3108_v18 = vadd.f32 %v4069_v16, %v5441_v37  ;;  %v3099_v19 = vpop.f32.mrb[107].mxu1 }
 0x52b   :  { %4372 = vtanh.f32 %v3097_v21  ;;  %v3100_v45 = vadd.f32 %v5441_v37, %v3099_v19 }
 0x52c   :  { %4374 = vtanh.f32 %v3108_v18 }
 0x52d   :  { %4376 = vtanh.f32 %v3100_v45 }
 0x52e   :  { %4378 = vpow2.f32 %v3615_v17 }
 0x52f   :  { %4380 = vpow2.f32 %v3613_v39 }
 0x530   :  { %4382 = vrcp.f32 %v2954_v31 }
 0x531   :  { %4384 = vrcp.f32 %v2952_v57 }
 0x532   :  { %4386 = vrcp.f32 %v2955_v61 }
 0x533   :  { %4388 = vrcp.f32 %v2953_v63 }
 0x534   :  { %v4371_v0 = vpop.eup %4370  ;;  %4390 = vpow2.f32 %v3618_v49 }
 0x535   :  { %v4373_v41 = vpop.eup %4372  ;;  %v3193_v2 = vmul.f32 %v4371_v0, %v3177_v60  ;;  %4392 = vpow2.f32 %v3616_v36 }
 0x536   :  { %v4375_v43 = vpop.eup %4374  ;;  %v3191_v27 = vmul.f32 %v4373_v41, %v3175_v6  ;;  %4394 = vpow2.f32 %v3619_v3 }
 0x537   :  { %v4377_v44 = vpop.eup %4376  ;;  %v3194_v10 = vmul.f32 %v4375_v43, %v3178_v35  ;;  %v4072_v26 = vpop.f32.mrb[108].mxu1  ;;  %v3289_v11 = vmul.f32 %v5339_v12, %v3193_v2  ;;  %4396 = vpow2.f32 %v3617_v33 }
 0x538   :  { %v3192_v21 = vmul.f32 %v4377_v44, %v3176_v58  ;;  %v3121_v16 = vadd.f32 %v4072_v26, %v5441_v37  ;;  %v3112_v13 = vpop.f32.mrb[109].mxu1  ;;  %v3287_v18 = vmul.f32 %v5327_v52, %v3191_v27  ;;  %v4379_v19 = vpop.eup %4378  ;;  %4398 = vrcp.f32 %v2958_v62 }
 0x539   :  { %v3113_v17 = vadd.f32 %v5441_v37, %v3112_v13  ;;  %v4073_v45 = vpop.f32.mrb[110].mxu1  ;;  %v3290_v48 = vmul.f32 %v5329_v40, %v3194_v10  ;;  %v4381_v39 = vpop.eup %4380  ;;  %v2959_v14 = vadd.f32 1.0, %v4379_v19 }
 0x53a   :  { %4400 = vtanh.f32 %v3121_v16  ;;  %v3124_v22 = vadd.f32 %v4073_v45, %v5441_v37  ;;  %v3115_v12 = vpop.f32.mrb[111].mxu1  ;;  %v3288_v31 = vmul.f32 %v5335_v53, %v3192_v21  ;;  %v5466_v55 = vadd.f32 %v3289_v11, %v3287_v18  ;;  %v4383_v15 = vpop.eup %4382 }
 0x53b   :  { %4402 = vtanh.f32 %v3113_v17  ;;  %v3116_v52 = vadd.f32 %v5441_v37, %v3115_v12  ;;  %v4385_v57 = vpop.eup %4384  ;;  %v2957_v40 = vadd.f32 1.0, %v4381_v39  ;;  %v3181_v33 = vsub.f32 1.0, %v4383_v15 }
 0x53c   :  { %4404 = vtanh.f32 %v3124_v22  ;;  %v5469_v8 = vadd.f32 %v3290_v48, %v3288_v31  ;;  %v4387_v61 = vpop.eup %4386  ;;  %v3179_v2 = vsub.f32 1.0, %v4385_v57  ;;  %v4146_v31 = vld [vmem:[%s5551_s17] sm:$0xff]  }
 0x53d   :  { %4406 = vtanh.f32 %v3116_v52  ;;  %v4389_v54 = vpop.eup %4388  ;;  %v3182_v27 = vsub.f32 1.0, %v4387_v61  ;;  %4082 = vmatprep.subr.bf16.mxu0 %v4146_v31 }
 0x53e   :  { %4408 = vrcp.f32 %v2956_v5  ;;  %v4391_v30 = vpop.eup %4390  ;;  %v3180_v11 = vsub.f32 1.0, %v4389_v54  ;;  %4083 = vmatpush3.bf16.msra.mxu0 %v4146_v31 }
 0x53f   :  { %v4076_v63 = vpop.f32.mrb[112].mxu1  ;;  %v4393_v51 = vpop.eup %4392  ;;  %4410 = vrcp.f32 %v2959_v14  ;;  %v2962_v60 = vadd.f32 1.0, %v4391_v30 }
 0x540   :  { %v3137_v53 = vadd.f32 %v4076_v63, %v5441_v37  ;;  %v3128_v29 = vpop.f32.mrb[113].mxu1  ;;  %v4395_v49 = vpop.eup %4394  ;;  %4412 = vrcp.f32 %v2957_v40  ;;  %v2960_v41 = vadd.f32 1.0, %v4393_v51 }
 0x541   :  { %v3129_v23 = vadd.f32 %v5441_v37, %v3128_v29  ;;  %v4077_v36 = vpop.f32.mrb[114].mxu1  ;;  %v4397_v47 = vpop.eup %4396  ;;  %v2963_v43 = vadd.f32 1.0, %v4395_v49 }
 0x542   :  { %4414 = vtanh.f32 %v3137_v53  ;;  %v3140_v3 = vadd.f32 %v4077_v36, %v5441_v37  ;;  %v3131_v0 = vpop.f32.mrb[115].mxu1  ;;  %v4399_v6 = vpop.eup %4398  ;;  %v2961_v44 = vadd.f32 1.0, %v4397_v47 }
 0x543   :  { %4416 = vtanh.f32 %v3129_v23  ;;  %v3132_v35 = vadd.f32 %v5441_v37, %v3131_v0  ;;  %v3185_v54 = vsub.f32 1.0, %v4399_v6  ;;  %v4148_v23 = vld [vmem:[%s5551_s17 + $0x10] sm:$0xff]  }
 0x544   :  { %v4401_v62 = vpop.eup %4400  ;;  %4418 = vtanh.f32 %v3140_v3 }
 0x545   :  { %v4403_v58 = vpop.eup %4402  ;;  %4420 = vtanh.f32 %v3132_v35  ;;  %v3197_v10 = vmul.f32 %v4401_v62, %v3181_v33 }
 0x546   :  { %v4405_v26 = vpop.eup %4404  ;;  %4422 = vrcp.f32 %v2962_v60  ;;  %v3195_v21 = vmul.f32 %v4403_v58, %v3179_v2 }
 0x547   :  { %v4407_v16 = vpop.eup %4406  ;;  %4424 = vrcp.f32 %v2960_v41  ;;  %v4080_v13 = vpop.f32.mrb[116].mxu1  ;;  %v3198_v18 = vmul.f32 %v4405_v26, %v3182_v27  ;;  %v3293_v12 = vmul.f32 %v5357_v38, %v3197_v10 }
 0x548   :  { %v4409_v19 = vpop.eup %4408  ;;  %4426 = vrcp.f32 %v2963_v43  ;;  %v3153_v5 = vadd.f32 %v4080_v13, %v5441_v37  ;;  %v3144_v17 = vpop.f32.mrb[117].mxu1  ;;  %v3196_v45 = vmul.f32 %v4407_v16, %v3180_v11  ;;  %v3291_v48 = vmul.f32 %v5351_v34, %v3195_v21  ;;  %v4147_v34 = vld [vmem:[%s5551_s17 + $0x8] sm:$0xff]  }
 0x549   :  { %4428 = vrcp.f32 %v2961_v44  ;;  %v3145_v39 = vadd.f32 %v5441_v37, %v3144_v17  ;;  %v4081_v22 = vpop.f32.mrb[118].mxu1  ;;  %v4411_v15 = vpop.eup %4410  ;;  %v3183_v38 = vsub.f32 1.0, %v4409_v19  ;;  %v3294_v51 = vmul.f32 %v5345_v59, %v3198_v18  ;;  %4084 = vmatprep.subr.bf16.mxu0 %v4147_v34 }
 0x54a   :  { %4430 = vtanh.f32 %v3153_v5  ;;  %v3156_v52 = vadd.f32 %v4081_v22, %v5441_v37  ;;  %v3147_v57 = vpop.f32.mrb[119].mxu1  ;;  %v3292_v14 = vmul.f32 %v5337_v7, %v3196_v45  ;;  %v3307_v61 = vadd.f32 %v5466_v55, %v3291_v48  ;;  %v4413_v40 = vpop.eup %4412  ;;  %4085 = vmatpush3.bf16.msra.mxu0 %v4147_v34 }
 0x54b   :  { %4432 = vtanh.f32 %v3145_v39  ;;  %v3148_v30 = vadd.f32 %v5441_v37, %v3147_v57  ;;  %v3186_v29 = vsub.f32 1.0, %v4411_v15  ;;  %v3184_v37 = vsub.f32 1.0, %v4413_v40  ;;  %4086 = vmatprep.subr.bf16.mxu0 %v4148_v23 }
 0x54c   :  { %v4415_v63 = vpop.eup %4414  ;;  %4434 = vtanh.f32 %v3156_v52  ;;  %v3308_v53 = vadd.f32 %v5469_v8, %v3292_v14  ;;  %v3309_v7 = vadd.f32 %v3307_v61, %v3293_v12 }
 0x54d   :  { %v4417_v55 = vpop.eup %4416  ;;  %v3201_v49 = vmul.f32 %v4415_v63, %v3185_v54  ;;  %4436 = vtanh.f32 %v3148_v30 }
 0x54e   :  { %v4419_v36 = vpop.eup %4418  ;;  %v3199_v47 = vmul.f32 %v4417_v55, %v3183_v38  ;;  %v3310_v60 = vadd.f32 %v3308_v53, %v3294_v51  ;;  %4087 = vmatpush3.bf16.msra.mxu0 %v4148_v23 }
 0x54f   :  { %v4421_v3 = vpop.eup %4420  ;;  %v3202_v0 = vmul.f32 %v4419_v36, %v3186_v29  ;;  %v3297_v59 = vmul.f32 %v5347_v20, %v3201_v49 }
 0x550   :  { %v4423_v8 = vpop.eup %4422  ;;  %v3200_v6 = vmul.f32 %v4421_v3, %v3184_v37  ;;  %v4103_v33 = vpack.i.bf16 %v3310_v60, %v3309_v7  ;;  %v3295_v41 = vmul.f32 %v5343_v4, %v3199_v47 }
 0x551   :  { %v4425_v35 = vpop.eup %4424  ;;  %v3298_v62 = vmul.f32 %v5333_v9, %v3202_v0  ;;  %v3189_v44 = vsub.f32 1.0, %v4423_v8 }
 0x552   :  { %v4427_v2 = vpop.eup %4426  ;;  %4104 = vrot.lane.b32.xlu1 %v4103_v33, %s4443_s2  ;;  %v3296_v43 = vmul.f32 %v5331_v1, %v3200_v6  ;;  %v3313_v58 = vadd.f32 %v3297_v59, %v3295_v41  ;;  %v3187_v10 = vsub.f32 1.0, %v4425_v35  ;;  %v4149_v1 = vld [vmem:[%s5551_s17 + $0x18] sm:$0xff]  }
 0x553   :  { %v4429_v27 = vpop.eup %4428  ;;  %v3190_v4 = vsub.f32 1.0, %v4427_v2  ;;  %4088 = vmatprep.subr.bf16.mxu0 %v4149_v1 }
 0x554   :  { %v4431_v20 = vpop.eup %4430  ;;  %v3314_v26 = vadd.f32 %v3298_v62, %v3296_v43  ;;  %v3188_v13 = vsub.f32 1.0, %v4429_v27  ;;  %4089 = vmatpush3.bf16.msra.mxu0 %v4149_v1 }
 0x555   :  { %v4433_v11 = vpop.eup %4432  ;;  %v3205_v21 = vmul.f32 %v4431_v20, %v3189_v44 }
 0x556   :  { %v4435_v16 = vpop.eup %4434  ;;  %v3203_v9 = vmul.f32 %v4433_v11, %v3187_v10 }
 0x557   :  { %v4437_v18 = vpop.eup %4436  ;;  %v3206_v19 = vmul.f32 %v4435_v16, %v3190_v4  ;;  %v3301_v48 = vmul.f32 %v5359_v25, %v3205_v21 }
 0x558   :  { %v3204_v5 = vmul.f32 %v4437_v18, %v3188_v13  ;;  %v3299_v17 = vmul.f32 %v5353_v56, %v3203_v9 }
 0x559   :  { %v3302_v22 = vmul.f32 %v5349_v24, %v3206_v19 }
 0x55a   :  { %v3300_v45 = vmul.f32 %v5341_v42, %v3204_v5  ;;  %v3315_v39 = vadd.f32 %v3313_v58, %v3299_v17 }
 0x55c   :  { %v3316_v12 = vadd.f32 %v3314_v26, %v3300_v45  ;;  %v3317_v31 = vadd.f32 %v3315_v39, %v3301_v48 }
 0x55e   :  { %v3318_v15 = vadd.f32 %v3316_v12, %v3302_v22 }
 0x560   :  { %v4108_v52 = vpack.i.bf16 %v3318_v15, %v3317_v31 }
 0x562   :  { %4109 = vrot.lane.b32.xlu0 %v4108_v52, %s4443_s2 }
 0x5c4   :  { %v4105_v56 = vpop.permute.xlu1 %4104 }
 0x5c5   :  { %v4107_v57 = vunpack.i.h.bf16 %v4105_v56  ;;  %v4106_v14 = vunpack.i.l.bf16 %v4105_v56 }
 0x5c7   :  { %v3343_v61 = vsel %vm1188_vm5, %v5414_v28, %v4106_v14  ;;  %v3344_v42 = vsel %vm1188_vm5, %v5393_v46, %v4107_v57  ;;  %v3631_v28 = vld [vmem:[%s5552_s18] ss:$0 sm:$0xff] }
 0x5c8   :  { %v3347_v25 = vpack.c.bf16 %v3344_v42, %v3343_v61 }
 0x5ca   :  { %4090 = vmatprep.mubr.msk.bf16.mxu0 %vm3380_vm7, %v3347_v25 }
 0x5d4   :  { %v4110_v34 = vpop.permute.xlu0 %4109 }
 0x5d5   :  { %v4112_v24 = vunpack.i.h.bf16 %v4110_v34  ;;  %v4111_v40 = vunpack.i.l.bf16 %v4110_v34 }
 0x5d7   :  { %v3345_v54 = vsel %vm1188_vm5, %v5417_v50, %v4111_v40  ;;  %v3346_v38 = vsel %vm1188_vm5, %v5401_v32, %v4112_v24 }
 0x5d8   :  { %v3348_v30 = vpack.c.bf16 %v3346_v38, %v3345_v54 }
 0x5da   :  { %4091 = vmatmul.mubr.msk.bf16.vlgmr.msra.gmra.mrb[120].mxu0 %vm3380_vm7, %v3348_v30 }
 0x6ad   :  { %v4092_v63 = vpop.f32.mrb[120].mxu0 }
 0x6ae   :  { %v3430_v46 = vadd.f32 %v4092_v63, %v3631_v28  ;;  %v3421_v51 = vpop.f32.mrb[121].mxu0 }
 0x6af   :  { %v3422_v53 = vadd.f32 %v3631_v28, %v3421_v51  ;;  %v4093_v7 = vpop.f32.mrb[122].mxu0 }
 0x6b0   :  { %v3438_v55 = vmax.f32 %v3430_v46, 0.0  ;;  %v3433_v29 = vadd.f32 %v4093_v7, %v3631_v28  ;;  %v3424_v49 = vpop.f32.mrb[123].mxu0 }
 0x6b1   :  { %v3436_v23 = vmax.f32 %v3422_v53, 0.0  ;;  %v3425_v36 = vadd.f32 %v3631_v28, %v3424_v49 }
 0x6b2   :  { %3442 = vst.msk [vmem:[%s5553_s19 + $0x10] sm:$0xff] %vm221_vm1, %v3438_v55  ;;  %v3439_v32 = vmax.f32 %v3433_v29, 0.0 }
 0x6b3   :  { %3440 = vst.msk [vmem:[%s5553_s19] sm:$0xff] %vm221_vm1, %v3436_v23  ;;  %v3437_v50 = vmax.f32 %v3425_v36, 0.0 }
 0x6b4   :  { %3443 = vst.msk [vmem:[%s5553_s19 + $0x18] sm:$0xff] %vm221_vm1, %v3439_v32 }
 0x6b5   :  { %3441 = vst.msk [vmem:[%s5553_s19 + $0x8] sm:$0xff] %vm221_vm1, %v3437_v50 }

</bundles_post_ra>
